<compile_context>
chip_gen: v5e
topology: v5e:2x2
jax: 0.10.0
libtpu: 0.0.40
codegen_flags: <defaults>
</compile_context>

<pallas_src>
import functools

import jax
import jax.numpy as jnp
from jax import lax
from jax.experimental import pallas as pl
from jax.experimental.pallas import tpu as pltpu

VMEM_SPEC = pl.BlockSpec(memory_space=pltpu.MemorySpace.VMEM)


# --------------------------- Model configuration --------------------------- #

B = 8                        # batch size
USER_FEA_FIELDS = [50, 30]   # vocab sizes per user feature field
ITEM_FEA_FIELDS = [100, 40]  # vocab sizes per item feature field
USER_EMB_DIM = 16
ITEM_EMB_DIM = 16
SEQ_FIELDS = 2
SEQ_LEN = 8
BLOCK_IN_DIM = 32
TOWER_OUT_DIM = 16
NUM_LAYERS = 2
REG = 1e-4

EMB = USER_EMB_DIM                      # == ITEM_EMB_DIM
H = BLOCK_IN_DIM
W_COLS = max(BLOCK_IN_DIM, TOWER_OUT_DIM)


def _round8(n: int) -> int:
    return ((n + 7) // 8) * 8


# ------------------ Static packing layouts (Python ints only) -------------- #

def _build_table_layout():
    user_tbl, item_tbl, off = [], [], 0
    for v in USER_FEA_FIELDS:
        user_tbl.append((off, _round8(v), v))      # (row_offset, padded_vocab, vocab)
        off += _round8(v)
    for v in ITEM_FEA_FIELDS:
        item_tbl.append((off, _round8(v), v))
        off += _round8(v)
    return tuple(user_tbl), tuple(item_tbl), off


USER_TBL_LAYOUT, ITEM_TBL_LAYOUT, TBL_ROWS = _build_table_layout()


def _build_weight_layout():
    entries, off = {}, 0

    def add(name, rows, cols):
        nonlocal off
        entries[name] = (off, rows, cols)
        off += _round8(rows)

    users_trans_in = len(USER_FEA_FIELDS) * USER_EMB_DIM + SEQ_FIELDS * ITEM_EMB_DIM
    items_trans_in = len(ITEM_FEA_FIELDS) * ITEM_EMB_DIM
    add("users_trans_w", users_trans_in, H)
    add("users_trans_b", 1, H)
    add("items_trans_w", items_trans_in, H)
    add("items_trans_b", 1, H)
    for tower in ("user", "item"):
        for li in range(NUM_LAYERS):
            out = TOWER_OUT_DIM if li == NUM_LAYERS - 1 else H
            add(f"{tower}_w{li}", H, out)
            add(f"{tower}_b{li}", 1, out)
    return entries, off


W_LAYOUT, W_ROWS = _build_weight_layout()


def _tower_descs(tower):
    descs = []
    for li in range(NUM_LAYERS):
        w_off, w_rows, w_cols = W_LAYOUT[f"{tower}_w{li}"]
        b_off, _, _ = W_LAYOUT[f"{tower}_b{li}"]
        descs.append((w_off, w_rows, w_cols, b_off))
    return tuple(descs)


USER_TOWER_DESCS = _tower_descs("user")
ITEM_TOWER_DESCS = _tower_descs("item")


# ------------------------------ Fused kernel ------------------------------- #

def _fused_forward_kernel(users_ref, items_ref, hist_ref, tables_ref, weights_ref,
                          score_ref, regs_ref, *, reg):
    """Whole forward path (gathers + pooling + MLPs + normalize + score + regs)."""
    users = users_ref[...]                       # [B, n_user_fields] int32
    items = items_ref[...]                       # [B, n_item_fields] int32
    hist = hist_ref[...]                         # [B, SEQ_FIELDS*SEQ_LEN] int32
    b = users.shape[0]

    # --- embedding gather as a one-hot matmul on the MXU (vocab <= 104) ---
    def gather(idx_col, off, vpad):
        iota = lax.broadcasted_iota(jnp.int32, (b, vpad), 1)
        onehot = (idx_col == iota).astype(jnp.float32)          # [B, vpad]
        return jnp.dot(onehot, tables_ref[off:off + vpad, :],
                       preferred_element_type=jnp.float32)      # [B, EMB]

    u_embs = [gather(users[:, f:f + 1], off, vpad)
              for f, (off, vpad, _) in enumerate(USER_TBL_LAYOUT)]
    i_embs = [gather(items[:, f:f + 1], off, vpad)
              for f, (off, vpad, _) in enumerate(ITEM_TBL_LAYOUT)]

    # --- masked mean pooling fused with the history gather ---
    # pooled_sum[b,d] = sum_l mask[b,l]*T[idx[b,l],d] = (masked one-hot histogram) @ T
    h0 = hist[:, 0:SEQ_LEN]                                     # field-0 ids -> mask
    mask = (h0 != 0).astype(jnp.float32)                        # [B, L]
    count = jnp.sum(mask, axis=1, keepdims=True)                # [B, 1]
    inv_count = pl.reciprocal(jnp.maximum(count, 1.0), approx=False)   # EUP

    pooled = []
    for f in range(SEQ_FIELDS):
        off, vpad, _ = ITEM_TBL_LAYOUT[f]                       # history uses item tables
        hf = hist[:, f * SEQ_LEN:(f + 1) * SEQ_LEN]             # [B, L]
        iota = lax.broadcasted_iota(jnp.int32, (b, vpad), 1)
        histo = jnp.zeros((b, vpad), jnp.float32)
        for l in range(SEQ_LEN):                                # static unroll, 2-D only
            onehot_l = (hf[:, l:l + 1] == iota).astype(jnp.float32)
            histo = histo + mask[:, l:l + 1] * onehot_l
        psum = jnp.dot(histo, tables_ref[off:off + vpad, :],
                       preferred_element_type=jnp.float32)      # [B, EMB]
        pooled.append(psum * inv_count)

    # --- trans Linear layers: concat realized as split matmuls ---
    def wslice(name):
        off, rows, cols = W_LAYOUT[name]
        return weights_ref[off:off + rows, 0:cols]

    def trans(pieces, w_name, b_name):
        w_off, _, w_cols = W_LAYOUT[w_name]
        y = wslice(b_name)                                      # [1, H] bias
        r = w_off
        for p in pieces:
            d = p.shape[1]
            y = y + jnp.dot(p, weights_ref[r:r + d, 0:w_cols],
                            preferred_element_type=jnp.float32)
            r += d
        return y

    u_x = trans(u_embs + pooled, "users_trans_w", "users_trans_b")
    i_x = trans(i_embs, "items_trans_w", "items_trans_b")

    # --- tower MLP blocks: sum of previous tower inputs -> Linear [+ReLU] ---
    def run_tower(x0, descs):
        inputs = [x0]
        n = len(descs)
        for li, (w_off, w_rows, w_cols, b_off) in enumerate(descs):
            xin = inputs[0]
            for extra in inputs[1:]:
                xin = xin + extra
            y = (jnp.dot(xin, weights_ref[w_off:w_off + w_rows, 0:w_cols],
                         preferred_element_type=jnp.float32)
                 + weights_ref[b_off:b_off + 1, 0:w_cols])
            if li != n - 1:                       # static: ReLU on all but last
                y = jnp.maximum(y, 0.0)
            inputs.append(y)
        return inputs[-1]

    u_last = run_tower(u_x, USER_TOWER_DESCS)
    i_last = run_tower(i_x, ITEM_TOWER_DESCS)

    # F.normalize(x, p=2, dim=1, eps=1e-12) == x * rsqrt(max(sumsq, eps^2))
    def l2_normalize(x):
        ss = jnp.sum(x * x, axis=1, keepdims=True)
        return x * lax.rsqrt(jnp.maximum(ss, 1e-24))

    u_out = l2_normalize(u_last)
    i_out = l2_normalize(i_last)

    # score = U @ V.T : contract dim 1 of both operands directly on the MXU.
    score_ref[...] = lax.dot_general(
        u_out, i_out, dimension_numbers=(((1,), (1,)), ((), ())),
        preferred_element_type=jnp.float32)

    # regs = reg * (||cat(u_embs, pooled)||_F + ||cat(i_embs)||_F)
    def sum_sq(x):
        return jnp.sum(jnp.sum(x * x, axis=1, keepdims=True),
                       axis=0, keepdims=True)                   # [1, 1]

    uss = sum_sq(u_embs[0])
    for p in u_embs[1:] + pooled:
        uss = uss + sum_sq(p)
    iss = sum_sq(i_embs[0])
    for p in i_embs[1:]:
        iss = iss + sum_sq(p)
    regs_ref[...] = reg * (jnp.sqrt(uss) + jnp.sqrt(iss))


def fused_supernet_forward(users, items, hist2d, tables, weights):
    """Single pallas_call for the whole forward. Returns (score [B,B], regs [1,1])."""
    batch = users.shape[0]
    kernel = functools.partial(_fused_forward_kernel, reg=REG)
    score, regs = pl.pallas_call(
        kernel,
        out_shape=(jax.ShapeDtypeStruct((batch, batch), jnp.float32),
                   jax.ShapeDtypeStruct((1, 1), jnp.float32)),
        in_specs=[VMEM_SPEC] * 5,
        out_specs=(VMEM_SPEC, VMEM_SPEC),
        compiler_params=pltpu.CompilerParams(vmem_limit_bytes=32 * 1024 * 1024),
    )(users, items, hist2d, tables, weights)
    return score, regs


# --------------------------- Parameter construction ------------------------ #

def init_params(key):
    """Deterministic init; packs all tables / weights into two flat f32 buffers."""
    ks = jax.random.split(key, 8)
    user_tabs = [0.1 * jax.random.normal(ks[i], (USER_FEA_FIELDS[i], EMB), jnp.float32)
                 for i in range(len(USER_FEA_FIELDS))]
    item_tabs = [0.1 * jax.random.normal(ks[2 + i], (ITEM_FEA_FIELDS[i], EMB), jnp.float32)
                 for i in range(len(ITEM_FEA_FIELDS))]

    tables = jnp.zeros((TBL_ROWS, EMB), jnp.float32)
    for (off, _, vocab), tab in zip(USER_TBL_LAYOUT, user_tabs):
        tables = tables.at[off:off + vocab, :].set(tab)
    for (off, _, vocab), tab in zip(ITEM_TBL_LAYOUT, item_tabs):
        tables = tables.at[off:off + vocab, :].set(tab)

    weights = jnp.zeros((W_ROWS, W_COLS), jnp.float32)

    def put(name, arr):
        nonlocal weights
        off, rows, cols = W_LAYOUT[name]
        weights = weights.at[off:off + rows, 0:cols].set(arr)

    users_trans_in = W_LAYOUT["users_trans_w"][1]
    items_trans_in = W_LAYOUT["items_trans_w"][1]
    put("users_trans_w", 0.1 * jax.random.normal(ks[4], (users_trans_in, H), jnp.float32))
    put("users_trans_b", jnp.zeros((1, H), jnp.float32))
    put("items_trans_w", 0.1 * jax.random.normal(ks[5], (items_trans_in, H), jnp.float32))
    put("items_trans_b", jnp.zeros((1, H), jnp.float32))

    tower_keys = {"user": jax.random.split(ks[6], NUM_LAYERS),
                  "item": jax.random.split(ks[7], NUM_LAYERS)}
    for tower in ("user", "item"):
        for li in range(NUM_LAYERS):
            out = TOWER_OUT_DIM if li == NUM_LAYERS - 1 else H
            put(f"{tower}_w{li}",
                0.1 * jax.random.normal(tower_keys[tower][li], (H, out), jnp.float32))
            put(f"{tower}_b{li}", jnp.zeros((1, out), jnp.float32))

    return {"tables": tables, "weights": weights}


# ------------------------------- Forward pass ------------------------------ #

def forward(params, users, histories, items):
    """FixedSupernet.forward.

    users:     [B, n_user_fields]       int32 indices
    histories: [B, seq_fields, seq_len] int32 indices (0 == padding for mask)
    items:     [B, n_item_fields]       int32 indices
    Returns (score [B, B], regs scalar).
    """
    hist2d = histories.reshape(histories.shape[0], SEQ_FIELDS * SEQ_LEN)
    score, regs = fused_supernet_forward(users, items, hist2d,
                                         params["tables"], params["weights"])
    return score, regs[0, 0]


# ---------------------------------- main ----------------------------------- #

if __name__ == "__main__":
    root = jax.random.PRNGKey(0)
    k_param, k_u, k_i, k_h0, k_h1 = jax.random.split(root, 5)

    params = init_params(k_param)

    users = jnp.stack(
        [jax.random.randint(jax.random.fold_in(k_u, i), (B,), 0, USER_FEA_FIELDS[i], jnp.int32)
         for i in range(len(USER_FEA_FIELDS))], axis=1)                     # [B, 2]
    items = jnp.stack(
        [jax.random.randint(jax.random.fold_in(k_i, i), (B,), 0, ITEM_FEA_FIELDS[i], jnp.int32)
         for i in range(len(ITEM_FEA_FIELDS))], axis=1)                     # [B, 2]
    histories = jnp.stack(
        [jax.random.randint(k_h0, (B, SEQ_LEN), 0, ITEM_FEA_FIELDS[0], jnp.int32),
         jax.random.randint(k_h1, (B, SEQ_LEN), 0, ITEM_FEA_FIELDS[1], jnp.int32)],
        axis=1)                                                             # [B, 2, L]

    score, regs = jax.jit(forward)(params, users, histories, items)
    jax.block_until_ready((score, regs))

    assert score.shape == (B, B)
    assert regs.shape == ()
    print("KERNEL_OK")
</pallas_src>

<mosaic_0001>
module attributes {stable_mosaic.version = 11 : i64} {
  func.func @_fused_forward_kernel(%arg0: memref<8x2xi32, #tpu.memory_space<vmem>>, %arg1: memref<8x2xi32, #tpu.memory_space<vmem>>, %arg2: memref<8x16xi32, #tpu.memory_space<vmem>>, %arg3: memref<232x16xf32, #tpu.memory_space<vmem>>, %arg4: memref<272x32xf32, #tpu.memory_space<vmem>>, %arg5: memref<8x8xf32, #tpu.memory_space<vmem>>, %arg6: memref<1x1xf32, #tpu.memory_space<vmem>>) attributes {dimension_semantics = [], scalar_prefetch = 0 : i64, scratch_operands = 0 : i64, tpu.core_type = #tpu.core_type<tc>} {
    %c0 = arith.constant 0 : index
    %c0_0 = arith.constant 0 : index
    %0 = vector.load %arg0[%c0, %c0_0] : memref<8x2xi32, #tpu.memory_space<vmem>>, vector<8x2xi32>
    %c0_1 = arith.constant 0 : index
    %c0_2 = arith.constant 0 : index
    %1 = vector.load %arg1[%c0_1, %c0_2] : memref<8x2xi32, #tpu.memory_space<vmem>>, vector<8x2xi32>
    %c0_3 = arith.constant 0 : index
    %c0_4 = arith.constant 0 : index
    %2 = vector.load %arg2[%c0_3, %c0_4] : memref<8x16xi32, #tpu.memory_space<vmem>>, vector<8x16xi32>
    %3 = vector.extract_strided_slice %0 {offsets = [0, 0], sizes = [8, 1], strides = [1, 1]} : vector<8x2xi32> to vector<8x1xi32>
    %4 = tpu.iota {dimensions = array<i32: 1>} : vector<8x56xi32>
    %5 = vector.broadcast %3 : vector<8x1xi32> to vector<8x56xi32>
    %6 = arith.cmpi eq, %5, %4 : vector<8x56xi32>
    %7 = arith.extui %6 : vector<8x56xi1> to vector<8x56xi32>
    %8 = arith.sitofp %7 : vector<8x56xi32> to vector<8x56xf32>
    %c0_5 = arith.constant 0 : index
    %c0_6 = arith.constant 0 : index
    %9 = vector.load %arg3[%c0_5, %c0_6] : memref<232x16xf32, #tpu.memory_space<vmem>>, vector<56x16xf32>
    %cst = arith.constant dense<0.000000e+00> : vector<8x16xf32>
    %10 = tpu.matmul %8, %9, %cst {dimension_numbers = #tpu.dot_dimension_numbers<[1], [0], [0], [1], [0, 0, 1, 1], [], []>} : vector<8x56xf32>, vector<56x16xf32>, vector<8x16xf32> -> vector<8x16xf32>
    %11 = vector.extract_strided_slice %0 {offsets = [0, 1], sizes = [8, 1], strides = [1, 1]} : vector<8x2xi32> to vector<8x1xi32>
    %12 = tpu.iota {dimensions = array<i32: 1>} : vector<8x32xi32>
    %13 = vector.broadcast %11 : vector<8x1xi32> to vector<8x32xi32>
    %14 = arith.cmpi eq, %13, %12 : vector<8x32xi32>
    %15 = arith.extui %14 : vector<8x32xi1> to vector<8x32xi32>
    %16 = arith.sitofp %15 : vector<8x32xi32> to vector<8x32xf32>
    %c56 = arith.constant 56 : index
    %c0_7 = arith.constant 0 : index
    %17 = vector.load %arg3[%c56, %c0_7] : memref<232x16xf32, #tpu.memory_space<vmem>>, vector<32x16xf32>
    %cst_8 = arith.constant dense<0.000000e+00> : vector<8x16xf32>
    %18 = tpu.matmul %16, %17, %cst_8 {dimension_numbers = #tpu.dot_dimension_numbers<[1], [0], [0], [1], [0, 0, 1, 1], [], []>} : vector<8x32xf32>, vector<32x16xf32>, vector<8x16xf32> -> vector<8x16xf32>
    %19 = vector.extract_strided_slice %1 {offsets = [0, 0], sizes = [8, 1], strides = [1, 1]} : vector<8x2xi32> to vector<8x1xi32>
    %20 = tpu.iota {dimensions = array<i32: 1>} : vector<8x104xi32>
    %21 = vector.broadcast %19 : vector<8x1xi32> to vector<8x104xi32>
    %22 = arith.cmpi eq, %21, %20 : vector<8x104xi32>
    %23 = arith.extui %22 : vector<8x104xi1> to vector<8x104xi32>
    %24 = arith.sitofp %23 : vector<8x104xi32> to vector<8x104xf32>
    %c88 = arith.constant 88 : index
    %c0_9 = arith.constant 0 : index
    %25 = vector.load %arg3[%c88, %c0_9] : memref<232x16xf32, #tpu.memory_space<vmem>>, vector<104x16xf32>
    %cst_10 = arith.constant dense<0.000000e+00> : vector<8x16xf32>
    %26 = tpu.matmul %24, %25, %cst_10 {dimension_numbers = #tpu.dot_dimension_numbers<[1], [0], [0], [1], [0, 0, 1, 1], [], []>} : vector<8x104xf32>, vector<104x16xf32>, vector<8x16xf32> -> vector<8x16xf32>
    %27 = vector.extract_strided_slice %1 {offsets = [0, 1], sizes = [8, 1], strides = [1, 1]} : vector<8x2xi32> to vector<8x1xi32>
    %28 = tpu.iota {dimensions = array<i32: 1>} : vector<8x40xi32>
    %29 = vector.broadcast %27 : vector<8x1xi32> to vector<8x40xi32>
    %30 = arith.cmpi eq, %29, %28 : vector<8x40xi32>
    %31 = arith.extui %30 : vector<8x40xi1> to vector<8x40xi32>
    %32 = arith.sitofp %31 : vector<8x40xi32> to vector<8x40xf32>
    %c192 = arith.constant 192 : index
    %c0_11 = arith.constant 0 : index
    %33 = vector.load %arg3[%c192, %c0_11] : memref<232x16xf32, #tpu.memory_space<vmem>>, vector<40x16xf32>
    %cst_12 = arith.constant dense<0.000000e+00> : vector<8x16xf32>
    %34 = tpu.matmul %32, %33, %cst_12 {dimension_numbers = #tpu.dot_dimension_numbers<[1], [0], [0], [1], [0, 0, 1, 1], [], []>} : vector<8x40xf32>, vector<40x16xf32>, vector<8x16xf32> -> vector<8x16xf32>
    %35 = vector.extract_strided_slice %2 {offsets = [0, 0], sizes = [8, 8], strides = [1, 1]} : vector<8x16xi32> to vector<8x8xi32>
    %c0_i32 = arith.constant 0 : i32
    %36 = vector.broadcast %c0_i32 : i32 to vector<8x8xi32>
    %37 = arith.cmpi ne, %35, %36 : vector<8x8xi32>
    %38 = arith.extui %37 : vector<8x8xi1> to vector<8x8xi32>
    %39 = arith.sitofp %38 : vector<8x8xi32> to vector<8x8xf32>
    %cst_13 = arith.constant dense<0.000000e+00> : vector<8xf32>
    %40 = vector.multi_reduction <add>, %39, %cst_13 [1] : vector<8x8xf32> to vector<8xf32>
    %41 = vector.shape_cast %40 : vector<8xf32> to vector<8x1xf32>
    %cst_14 = arith.constant 1.000000e+00 : f32
    %42 = vector.broadcast %cst_14 : f32 to vector<8x1xf32>
    %43 = arith.maximumf %41, %42 : vector<8x1xf32>
    %44 = tpu.reciprocal %43 : vector<8x1xf32> -> vector<8x1xf32>
    %45 = vector.extract_strided_slice %2 {offsets = [0, 0], sizes = [8, 8], strides = [1, 1]} : vector<8x16xi32> to vector<8x8xi32>
    %46 = tpu.iota {dimensions = array<i32: 1>} : vector<8x104xi32>
    %cst_15 = arith.constant 0.000000e+00 : f32
    %47 = vector.broadcast %cst_15 : f32 to vector<8x104xf32>
    %48 = vector.extract_strided_slice %45 {offsets = [0, 0], sizes = [8, 1], strides = [1, 1]} : vector<8x8xi32> to vector<8x1xi32>
    %49 = vector.broadcast %48 : vector<8x1xi32> to vector<8x104xi32>
    %50 = arith.cmpi eq, %49, %46 : vector<8x104xi32>
    %51 = arith.extui %50 : vector<8x104xi1> to vector<8x104xi32>
    %52 = arith.sitofp %51 : vector<8x104xi32> to vector<8x104xf32>
    %53 = vector.extract_strided_slice %39 {offsets = [0, 0], sizes = [8, 1], strides = [1, 1]} : vector<8x8xf32> to vector<8x1xf32>
    %54 = vector.broadcast %53 : vector<8x1xf32> to vector<8x104xf32>
    %55 = arith.mulf %54, %52 : vector<8x104xf32>
    %56 = arith.addf %47, %55 : vector<8x104xf32>
    %57 = vector.extract_strided_slice %45 {offsets = [0, 1], sizes = [8, 1], strides = [1, 1]} : vector<8x8xi32> to vector<8x1xi32>
    %58 = vector.broadcast %57 : vector<8x1xi32> to vector<8x104xi32>
    %59 = arith.cmpi eq, %58, %46 : vector<8x104xi32>
    %60 = arith.extui %59 : vector<8x104xi1> to vector<8x104xi32>
    %61 = arith.sitofp %60 : vector<8x104xi32> to vector<8x104xf32>
    %62 = vector.extract_strided_slice %39 {offsets = [0, 1], sizes = [8, 1], strides = [1, 1]} : vector<8x8xf32> to vector<8x1xf32>
    %63 = vector.broadcast %62 : vector<8x1xf32> to vector<8x104xf32>
    %64 = arith.mulf %63, %61 : vector<8x104xf32>
    %65 = arith.addf %56, %64 : vector<8x104xf32>
    %66 = vector.extract_strided_slice %45 {offsets = [0, 2], sizes = [8, 1], strides = [1, 1]} : vector<8x8xi32> to vector<8x1xi32>
    %67 = vector.broadcast %66 : vector<8x1xi32> to vector<8x104xi32>
    %68 = arith.cmpi eq, %67, %46 : vector<8x104xi32>
    %69 = arith.extui %68 : vector<8x104xi1> to vector<8x104xi32>
    %70 = arith.sitofp %69 : vector<8x104xi32> to vector<8x104xf32>
    %71 = vector.extract_strided_slice %39 {offsets = [0, 2], sizes = [8, 1], strides = [1, 1]} : vector<8x8xf32> to vector<8x1xf32>
    %72 = vector.broadcast %71 : vector<8x1xf32> to vector<8x104xf32>
    %73 = arith.mulf %72, %70 : vector<8x104xf32>
    %74 = arith.addf %65, %73 : vector<8x104xf32>
    %75 = vector.extract_strided_slice %45 {offsets = [0, 3], sizes = [8, 1], strides = [1, 1]} : vector<8x8xi32> to vector<8x1xi32>
    %76 = vector.broadcast %75 : vector<8x1xi32> to vector<8x104xi32>
    %77 = arith.cmpi eq, %76, %46 : vector<8x104xi32>
    %78 = arith.extui %77 : vector<8x104xi1> to vector<8x104xi32>
    %79 = arith.sitofp %78 : vector<8x104xi32> to vector<8x104xf32>
    %80 = vector.extract_strided_slice %39 {offsets = [0, 3], sizes = [8, 1], strides = [1, 1]} : vector<8x8xf32> to vector<8x1xf32>
    %81 = vector.broadcast %80 : vector<8x1xf32> to vector<8x104xf32>
    %82 = arith.mulf %81, %79 : vector<8x104xf32>
    %83 = arith.addf %74, %82 : vector<8x104xf32>
    %84 = vector.extract_strided_slice %45 {offsets = [0, 4], sizes = [8, 1], strides = [1, 1]} : vector<8x8xi32> to vector<8x1xi32>
    %85 = vector.broadcast %84 : vector<8x1xi32> to vector<8x104xi32>
    %86 = arith.cmpi eq, %85, %46 : vector<8x104xi32>
    %87 = arith.extui %86 : vector<8x104xi1> to vector<8x104xi32>
    %88 = arith.sitofp %87 : vector<8x104xi32> to vector<8x104xf32>
    %89 = vector.extract_strided_slice %39 {offsets = [0, 4], sizes = [8, 1], strides = [1, 1]} : vector<8x8xf32> to vector<8x1xf32>
    %90 = vector.broadcast %89 : vector<8x1xf32> to vector<8x104xf32>
    %91 = arith.mulf %90, %88 : vector<8x104xf32>
    %92 = arith.addf %83, %91 : vector<8x104xf32>
    %93 = vector.extract_strided_slice %45 {offsets = [0, 5], sizes = [8, 1], strides = [1, 1]} : vector<8x8xi32> to vector<8x1xi32>
    %94 = vector.broadcast %93 : vector<8x1xi32> to vector<8x104xi32>
    %95 = arith.cmpi eq, %94, %46 : vector<8x104xi32>
    %96 = arith.extui %95 : vector<8x104xi1> to vector<8x104xi32>
    %97 = arith.sitofp %96 : vector<8x104xi32> to vector<8x104xf32>
    %98 = vector.extract_strided_slice %39 {offsets = [0, 5], sizes = [8, 1], strides = [1, 1]} : vector<8x8xf32> to vector<8x1xf32>
    %99 = vector.broadcast %98 : vector<8x1xf32> to vector<8x104xf32>
    %100 = arith.mulf %99, %97 : vector<8x104xf32>
    %101 = arith.addf %92, %100 : vector<8x104xf32>
    %102 = vector.extract_strided_slice %45 {offsets = [0, 6], sizes = [8, 1], strides = [1, 1]} : vector<8x8xi32> to vector<8x1xi32>
    %103 = vector.broadcast %102 : vector<8x1xi32> to vector<8x104xi32>
    %104 = arith.cmpi eq, %103, %46 : vector<8x104xi32>
    %105 = arith.extui %104 : vector<8x104xi1> to vector<8x104xi32>
    %106 = arith.sitofp %105 : vector<8x104xi32> to vector<8x104xf32>
    %107 = vector.extract_strided_slice %39 {offsets = [0, 6], sizes = [8, 1], strides = [1, 1]} : vector<8x8xf32> to vector<8x1xf32>
    %108 = vector.broadcast %107 : vector<8x1xf32> to vector<8x104xf32>
    %109 = arith.mulf %108, %106 : vector<8x104xf32>
    %110 = arith.addf %101, %109 : vector<8x104xf32>
    %111 = vector.extract_strided_slice %45 {offsets = [0, 7], sizes = [8, 1], strides = [1, 1]} : vector<8x8xi32> to vector<8x1xi32>
    %112 = vector.broadcast %111 : vector<8x1xi32> to vector<8x104xi32>
    %113 = arith.cmpi eq, %112, %46 : vector<8x104xi32>
    %114 = arith.extui %113 : vector<8x104xi1> to vector<8x104xi32>
    %115 = arith.sitofp %114 : vector<8x104xi32> to vector<8x104xf32>
    %116 = vector.extract_strided_slice %39 {offsets = [0, 7], sizes = [8, 1], strides = [1, 1]} : vector<8x8xf32> to vector<8x1xf32>
    %117 = vector.broadcast %116 : vector<8x1xf32> to vector<8x104xf32>
    %118 = arith.mulf %117, %115 : vector<8x104xf32>
    %119 = arith.addf %110, %118 : vector<8x104xf32>
    %c88_16 = arith.constant 88 : index
    %c0_17 = arith.constant 0 : index
    %120 = vector.load %arg3[%c88_16, %c0_17] : memref<232x16xf32, #tpu.memory_space<vmem>>, vector<104x16xf32>
    %cst_18 = arith.constant dense<0.000000e+00> : vector<8x16xf32>
    %121 = tpu.matmul %119, %120, %cst_18 {dimension_numbers = #tpu.dot_dimension_numbers<[1], [0], [0], [1], [0, 0, 1, 1], [], []>} : vector<8x104xf32>, vector<104x16xf32>, vector<8x16xf32> -> vector<8x16xf32>
    %122 = vector.broadcast %44 : vector<8x1xf32> to vector<8x16xf32>
    %123 = arith.mulf %121, %122 : vector<8x16xf32>
    %124 = vector.extract_strided_slice %2 {offsets = [0, 8], sizes = [8, 8], strides = [1, 1]} : vector<8x16xi32> to vector<8x8xi32>
    %125 = tpu.iota {dimensions = array<i32: 1>} : vector<8x40xi32>
    %cst_19 = arith.constant 0.000000e+00 : f32
    %126 = vector.broadcast %cst_19 : f32 to vector<8x40xf32>
    %127 = vector.extract_strided_slice %124 {offsets = [0, 0], sizes = [8, 1], strides = [1, 1]} : vector<8x8xi32> to vector<8x1xi32>
    %128 = vector.broadcast %127 : vector<8x1xi32> to vector<8x40xi32>
    %129 = arith.cmpi eq, %128, %125 : vector<8x40xi32>
    %130 = arith.extui %129 : vector<8x40xi1> to vector<8x40xi32>
    %131 = arith.sitofp %130 : vector<8x40xi32> to vector<8x40xf32>
    %132 = vector.extract_strided_slice %39 {offsets = [0, 0], sizes = [8, 1], strides = [1, 1]} : vector<8x8xf32> to vector<8x1xf32>
    %133 = vector.broadcast %132 : vector<8x1xf32> to vector<8x40xf32>
    %134 = arith.mulf %133, %131 : vector<8x40xf32>
    %135 = arith.addf %126, %134 : vector<8x40xf32>
    %136 = vector.extract_strided_slice %124 {offsets = [0, 1], sizes = [8, 1], strides = [1, 1]} : vector<8x8xi32> to vector<8x1xi32>
    %137 = vector.broadcast %136 : vector<8x1xi32> to vector<8x40xi32>
    %138 = arith.cmpi eq, %137, %125 : vector<8x40xi32>
    %139 = arith.extui %138 : vector<8x40xi1> to vector<8x40xi32>
    %140 = arith.sitofp %139 : vector<8x40xi32> to vector<8x40xf32>
    %141 = vector.extract_strided_slice %39 {offsets = [0, 1], sizes = [8, 1], strides = [1, 1]} : vector<8x8xf32> to vector<8x1xf32>
    %142 = vector.broadcast %141 : vector<8x1xf32> to vector<8x40xf32>
    %143 = arith.mulf %142, %140 : vector<8x40xf32>
    %144 = arith.addf %135, %143 : vector<8x40xf32>
    %145 = vector.extract_strided_slice %124 {offsets = [0, 2], sizes = [8, 1], strides = [1, 1]} : vector<8x8xi32> to vector<8x1xi32>
    %146 = vector.broadcast %145 : vector<8x1xi32> to vector<8x40xi32>
    %147 = arith.cmpi eq, %146, %125 : vector<8x40xi32>
    %148 = arith.extui %147 : vector<8x40xi1> to vector<8x40xi32>
    %149 = arith.sitofp %148 : vector<8x40xi32> to vector<8x40xf32>
    %150 = vector.extract_strided_slice %39 {offsets = [0, 2], sizes = [8, 1], strides = [1, 1]} : vector<8x8xf32> to vector<8x1xf32>
    %151 = vector.broadcast %150 : vector<8x1xf32> to vector<8x40xf32>
    %152 = arith.mulf %151, %149 : vector<8x40xf32>
    %153 = arith.addf %144, %152 : vector<8x40xf32>
    %154 = vector.extract_strided_slice %124 {offsets = [0, 3], sizes = [8, 1], strides = [1, 1]} : vector<8x8xi32> to vector<8x1xi32>
    %155 = vector.broadcast %154 : vector<8x1xi32> to vector<8x40xi32>
    %156 = arith.cmpi eq, %155, %125 : vector<8x40xi32>
    %157 = arith.extui %156 : vector<8x40xi1> to vector<8x40xi32>
    %158 = arith.sitofp %157 : vector<8x40xi32> to vector<8x40xf32>
    %159 = vector.extract_strided_slice %39 {offsets = [0, 3], sizes = [8, 1], strides = [1, 1]} : vector<8x8xf32> to vector<8x1xf32>
    %160 = vector.broadcast %159 : vector<8x1xf32> to vector<8x40xf32>
    %161 = arith.mulf %160, %158 : vector<8x40xf32>
    %162 = arith.addf %153, %161 : vector<8x40xf32>
    %163 = vector.extract_strided_slice %124 {offsets = [0, 4], sizes = [8, 1], strides = [1, 1]} : vector<8x8xi32> to vector<8x1xi32>
    %164 = vector.broadcast %163 : vector<8x1xi32> to vector<8x40xi32>
    %165 = arith.cmpi eq, %164, %125 : vector<8x40xi32>
    %166 = arith.extui %165 : vector<8x40xi1> to vector<8x40xi32>
    %167 = arith.sitofp %166 : vector<8x40xi32> to vector<8x40xf32>
    %168 = vector.extract_strided_slice %39 {offsets = [0, 4], sizes = [8, 1], strides = [1, 1]} : vector<8x8xf32> to vector<8x1xf32>
    %169 = vector.broadcast %168 : vector<8x1xf32> to vector<8x40xf32>
    %170 = arith.mulf %169, %167 : vector<8x40xf32>
    %171 = arith.addf %162, %170 : vector<8x40xf32>
    %172 = vector.extract_strided_slice %124 {offsets = [0, 5], sizes = [8, 1], strides = [1, 1]} : vector<8x8xi32> to vector<8x1xi32>
    %173 = vector.broadcast %172 : vector<8x1xi32> to vector<8x40xi32>
    %174 = arith.cmpi eq, %173, %125 : vector<8x40xi32>
    %175 = arith.extui %174 : vector<8x40xi1> to vector<8x40xi32>
    %176 = arith.sitofp %175 : vector<8x40xi32> to vector<8x40xf32>
    %177 = vector.extract_strided_slice %39 {offsets = [0, 5], sizes = [8, 1], strides = [1, 1]} : vector<8x8xf32> to vector<8x1xf32>
    %178 = vector.broadcast %177 : vector<8x1xf32> to vector<8x40xf32>
    %179 = arith.mulf %178, %176 : vector<8x40xf32>
    %180 = arith.addf %171, %179 : vector<8x40xf32>
    %181 = vector.extract_strided_slice %124 {offsets = [0, 6], sizes = [8, 1], strides = [1, 1]} : vector<8x8xi32> to vector<8x1xi32>
    %182 = vector.broadcast %181 : vector<8x1xi32> to vector<8x40xi32>
    %183 = arith.cmpi eq, %182, %125 : vector<8x40xi32>
    %184 = arith.extui %183 : vector<8x40xi1> to vector<8x40xi32>
    %185 = arith.sitofp %184 : vector<8x40xi32> to vector<8x40xf32>
    %186 = vector.extract_strided_slice %39 {offsets = [0, 6], sizes = [8, 1], strides = [1, 1]} : vector<8x8xf32> to vector<8x1xf32>
    %187 = vector.broadcast %186 : vector<8x1xf32> to vector<8x40xf32>
    %188 = arith.mulf %187, %185 : vector<8x40xf32>
    %189 = arith.addf %180, %188 : vector<8x40xf32>
    %190 = vector.extract_strided_slice %124 {offsets = [0, 7], sizes = [8, 1], strides = [1, 1]} : vector<8x8xi32> to vector<8x1xi32>
    %191 = vector.broadcast %190 : vector<8x1xi32> to vector<8x40xi32>
    %192 = arith.cmpi eq, %191, %125 : vector<8x40xi32>
    %193 = arith.extui %192 : vector<8x40xi1> to vector<8x40xi32>
    %194 = arith.sitofp %193 : vector<8x40xi32> to vector<8x40xf32>
    %195 = vector.extract_strided_slice %39 {offsets = [0, 7], sizes = [8, 1], strides = [1, 1]} : vector<8x8xf32> to vector<8x1xf32>
    %196 = vector.broadcast %195 : vector<8x1xf32> to vector<8x40xf32>
    %197 = arith.mulf %196, %194 : vector<8x40xf32>
    %198 = arith.addf %189, %197 : vector<8x40xf32>
    %c192_20 = arith.constant 192 : index
    %c0_21 = arith.constant 0 : index
    %199 = vector.load %arg3[%c192_20, %c0_21] : memref<232x16xf32, #tpu.memory_space<vmem>>, vector<40x16xf32>
    %cst_22 = arith.constant dense<0.000000e+00> : vector<8x16xf32>
    %200 = tpu.matmul %198, %199, %cst_22 {dimension_numbers = #tpu.dot_dimension_numbers<[1], [0], [0], [1], [0, 0, 1, 1], [], []>} : vector<8x40xf32>, vector<40x16xf32>, vector<8x16xf32> -> vector<8x16xf32>
    %201 = vector.broadcast %44 : vector<8x1xf32> to vector<8x16xf32>
    %202 = arith.mulf %200, %201 : vector<8x16xf32>
    %c64 = arith.constant 64 : index
    %c0_23 = arith.constant 0 : index
    %203 = vector.load %arg4[%c64, %c0_23] : memref<272x32xf32, #tpu.memory_space<vmem>>, vector<1x32xf32>
    %c0_24 = arith.constant 0 : index
    %c0_25 = arith.constant 0 : index
    %204 = vector.load %arg4[%c0_24, %c0_25] : memref<272x32xf32, #tpu.memory_space<vmem>>, vector<16x32xf32>
    %cst_26 = arith.constant dense<0.000000e+00> : vector<8x32xf32>
    %205 = tpu.matmul %10, %204, %cst_26 {dimension_numbers = #tpu.dot_dimension_numbers<[1], [0], [0], [1], [0, 0, 1, 1], [], []>} : vector<8x16xf32>, vector<16x32xf32>, vector<8x32xf32> -> vector<8x32xf32>
    %206 = vector.broadcast %203 : vector<1x32xf32> to vector<8x32xf32>
    %207 = arith.addf %206, %205 : vector<8x32xf32>
    %c16 = arith.constant 16 : index
    %c0_27 = arith.constant 0 : index
    %208 = vector.load %arg4[%c16, %c0_27] : memref<272x32xf32, #tpu.memory_space<vmem>>, vector<16x32xf32>
    %cst_28 = arith.constant dense<0.000000e+00> : vector<8x32xf32>
    %209 = tpu.matmul %18, %208, %cst_28 {dimension_numbers = #tpu.dot_dimension_numbers<[1], [0], [0], [1], [0, 0, 1, 1], [], []>} : vector<8x16xf32>, vector<16x32xf32>, vector<8x32xf32> -> vector<8x32xf32>
    %210 = arith.addf %207, %209 : vector<8x32xf32>
    %c32 = arith.constant 32 : index
    %c0_29 = arith.constant 0 : index
    %211 = vector.load %arg4[%c32, %c0_29] : memref<272x32xf32, #tpu.memory_space<vmem>>, vector<16x32xf32>
    %cst_30 = arith.constant dense<0.000000e+00> : vector<8x32xf32>
    %212 = tpu.matmul %123, %211, %cst_30 {dimension_numbers = #tpu.dot_dimension_numbers<[1], [0], [0], [1], [0, 0, 1, 1], [], []>} : vector<8x16xf32>, vector<16x32xf32>, vector<8x32xf32> -> vector<8x32xf32>
    %213 = arith.addf %210, %212 : vector<8x32xf32>
    %c48 = arith.constant 48 : index
    %c0_31 = arith.constant 0 : index
    %214 = vector.load %arg4[%c48, %c0_31] : memref<272x32xf32, #tpu.memory_space<vmem>>, vector<16x32xf32>
    %cst_32 = arith.constant dense<0.000000e+00> : vector<8x32xf32>
    %215 = tpu.matmul %202, %214, %cst_32 {dimension_numbers = #tpu.dot_dimension_numbers<[1], [0], [0], [1], [0, 0, 1, 1], [], []>} : vector<8x16xf32>, vector<16x32xf32>, vector<8x32xf32> -> vector<8x32xf32>
    %216 = arith.addf %213, %215 : vector<8x32xf32>
    %c104 = arith.constant 104 : index
    %c0_33 = arith.constant 0 : index
    %217 = vector.load %arg4[%c104, %c0_33] : memref<272x32xf32, #tpu.memory_space<vmem>>, vector<1x32xf32>
    %c72 = arith.constant 72 : index
    %c0_34 = arith.constant 0 : index
    %218 = vector.load %arg4[%c72, %c0_34] : memref<272x32xf32, #tpu.memory_space<vmem>>, vector<16x32xf32>
    %cst_35 = arith.constant dense<0.000000e+00> : vector<8x32xf32>
    %219 = tpu.matmul %26, %218, %cst_35 {dimension_numbers = #tpu.dot_dimension_numbers<[1], [0], [0], [1], [0, 0, 1, 1], [], []>} : vector<8x16xf32>, vector<16x32xf32>, vector<8x32xf32> -> vector<8x32xf32>
    %220 = vector.broadcast %217 : vector<1x32xf32> to vector<8x32xf32>
    %221 = arith.addf %220, %219 : vector<8x32xf32>
    %c88_36 = arith.constant 88 : index
    %c0_37 = arith.constant 0 : index
    %222 = vector.load %arg4[%c88_36, %c0_37] : memref<272x32xf32, #tpu.memory_space<vmem>>, vector<16x32xf32>
    %cst_38 = arith.constant dense<0.000000e+00> : vector<8x32xf32>
    %223 = tpu.matmul %34, %222, %cst_38 {dimension_numbers = #tpu.dot_dimension_numbers<[1], [0], [0], [1], [0, 0, 1, 1], [], []>} : vector<8x16xf32>, vector<16x32xf32>, vector<8x32xf32> -> vector<8x32xf32>
    %224 = arith.addf %221, %223 : vector<8x32xf32>
    %c112 = arith.constant 112 : index
    %c0_39 = arith.constant 0 : index
    %225 = vector.load %arg4[%c112, %c0_39] : memref<272x32xf32, #tpu.memory_space<vmem>>, vector<32x32xf32>
    %cst_40 = arith.constant dense<0.000000e+00> : vector<8x32xf32>
    %226 = tpu.matmul %216, %225, %cst_40 {dimension_numbers = #tpu.dot_dimension_numbers<[1], [0], [0], [1], [0, 0, 1, 1], [], []>} : vector<8x32xf32>, vector<32x32xf32>, vector<8x32xf32> -> vector<8x32xf32>
    %c144 = arith.constant 144 : index
    %c0_41 = arith.constant 0 : index
    %227 = vector.load %arg4[%c144, %c0_41] : memref<272x32xf32, #tpu.memory_space<vmem>>, vector<1x32xf32>
    %228 = vector.broadcast %227 : vector<1x32xf32> to vector<8x32xf32>
    %229 = arith.addf %226, %228 : vector<8x32xf32>
    %cst_42 = arith.constant 0.000000e+00 : f32
    %230 = vector.broadcast %cst_42 : f32 to vector<8x32xf32>
    %231 = arith.maximumf %229, %230 : vector<8x32xf32>
    %232 = arith.addf %216, %231 : vector<8x32xf32>
    %c152 = arith.constant 152 : index
    %c0_43 = arith.constant 0 : index
    %233 = vector.load %arg4[%c152, %c0_43] : memref<272x32xf32, #tpu.memory_space<vmem>>, vector<32x16xf32>
    %cst_44 = arith.constant dense<0.000000e+00> : vector<8x16xf32>
    %234 = tpu.matmul %232, %233, %cst_44 {dimension_numbers = #tpu.dot_dimension_numbers<[1], [0], [0], [1], [0, 0, 1, 1], [], []>} : vector<8x32xf32>, vector<32x16xf32>, vector<8x16xf32> -> vector<8x16xf32>
    %c184 = arith.constant 184 : index
    %c0_45 = arith.constant 0 : index
    %235 = vector.load %arg4[%c184, %c0_45] : memref<272x32xf32, #tpu.memory_space<vmem>>, vector<1x16xf32>
    %236 = vector.broadcast %235 : vector<1x16xf32> to vector<8x16xf32>
    %237 = arith.addf %234, %236 : vector<8x16xf32>
    %c192_46 = arith.constant 192 : index
    %c0_47 = arith.constant 0 : index
    %238 = vector.load %arg4[%c192_46, %c0_47] : memref<272x32xf32, #tpu.memory_space<vmem>>, vector<32x32xf32>
    %cst_48 = arith.constant dense<0.000000e+00> : vector<8x32xf32>
    %239 = tpu.matmul %224, %238, %cst_48 {dimension_numbers = #tpu.dot_dimension_numbers<[1], [0], [0], [1], [0, 0, 1, 1], [], []>} : vector<8x32xf32>, vector<32x32xf32>, vector<8x32xf32> -> vector<8x32xf32>
    %c224 = arith.constant 224 : index
    %c0_49 = arith.constant 0 : index
    %240 = vector.load %arg4[%c224, %c0_49] : memref<272x32xf32, #tpu.memory_space<vmem>>, vector<1x32xf32>
    %241 = vector.broadcast %240 : vector<1x32xf32> to vector<8x32xf32>
    %242 = arith.addf %239, %241 : vector<8x32xf32>
    %cst_50 = arith.constant 0.000000e+00 : f32
    %243 = vector.broadcast %cst_50 : f32 to vector<8x32xf32>
    %244 = arith.maximumf %242, %243 : vector<8x32xf32>
    %245 = arith.addf %224, %244 : vector<8x32xf32>
    %c232 = arith.constant 232 : index
    %c0_51 = arith.constant 0 : index
    %246 = vector.load %arg4[%c232, %c0_51] : memref<272x32xf32, #tpu.memory_space<vmem>>, vector<32x16xf32>
    %cst_52 = arith.constant dense<0.000000e+00> : vector<8x16xf32>
    %247 = tpu.matmul %245, %246, %cst_52 {dimension_numbers = #tpu.dot_dimension_numbers<[1], [0], [0], [1], [0, 0, 1, 1], [], []>} : vector<8x32xf32>, vector<32x16xf32>, vector<8x16xf32> -> vector<8x16xf32>
    %c264 = arith.constant 264 : index
    %c0_53 = arith.constant 0 : index
    %248 = vector.load %arg4[%c264, %c0_53] : memref<272x32xf32, #tpu.memory_space<vmem>>, vector<1x16xf32>
    %249 = vector.broadcast %248 : vector<1x16xf32> to vector<8x16xf32>
    %250 = arith.addf %247, %249 : vector<8x16xf32>
    %251 = arith.mulf %237, %237 : vector<8x16xf32>
    %cst_54 = arith.constant dense<0.000000e+00> : vector<8xf32>
    %252 = vector.multi_reduction <add>, %251, %cst_54 [1] : vector<8x16xf32> to vector<8xf32>
    %253 = vector.shape_cast %252 : vector<8xf32> to vector<8x1xf32>
    %cst_55 = arith.constant 1.000000e-24 : f32
    %254 = vector.broadcast %cst_55 : f32 to vector<8x1xf32>
    %255 = arith.maximumf %253, %254 : vector<8x1xf32>
    %256 = math.rsqrt %255 : vector<8x1xf32>
    %257 = vector.broadcast %256 : vector<8x1xf32> to vector<8x16xf32>
    %258 = arith.mulf %237, %257 : vector<8x16xf32>
    %259 = arith.mulf %250, %250 : vector<8x16xf32>
    %cst_56 = arith.constant dense<0.000000e+00> : vector<8xf32>
    %260 = vector.multi_reduction <add>, %259, %cst_56 [1] : vector<8x16xf32> to vector<8xf32>
    %261 = vector.shape_cast %260 : vector<8xf32> to vector<8x1xf32>
    %cst_57 = arith.constant 1.000000e-24 : f32
    %262 = vector.broadcast %cst_57 : f32 to vector<8x1xf32>
    %263 = arith.maximumf %261, %262 : vector<8x1xf32>
    %264 = math.rsqrt %263 : vector<8x1xf32>
    %265 = vector.broadcast %264 : vector<8x1xf32> to vector<8x16xf32>
    %266 = arith.mulf %250, %265 : vector<8x16xf32>
    %cst_58 = arith.constant dense<0.000000e+00> : vector<8x8xf32>
    %267 = tpu.matmul %258, %266, %cst_58 {dimension_numbers = #tpu.dot_dimension_numbers<[1], [1], [0], [0], [0, 0, 1, 0], [], []>} : vector<8x16xf32>, vector<8x16xf32>, vector<8x8xf32> -> vector<8x8xf32>
    %c0_59 = arith.constant 0 : index
    %c0_60 = arith.constant 0 : index
    %268 = vector.load %arg5[%c0_59, %c0_60] : memref<8x8xf32, #tpu.memory_space<vmem>>, vector<8x8xf32>
    tpu.vector_store %arg5[%c0_59, %c0_60], %267 {strides = array<i32>} : memref<8x8xf32, #tpu.memory_space<vmem>>, vector<8x8xf32>,
    %269 = arith.mulf %10, %10 : vector<8x16xf32>
    %cst_61 = arith.constant dense<0.000000e+00> : vector<8xf32>
    %270 = vector.multi_reduction <add>, %269, %cst_61 [1] : vector<8x16xf32> to vector<8xf32>
    %271 = vector.shape_cast %270 : vector<8xf32> to vector<8x1xf32>
    %cst_62 = arith.constant dense<0.000000e+00> : vector<1xf32>
    %272 = vector.multi_reduction <add>, %271, %cst_62 [0] : vector<8x1xf32> to vector<1xf32>
    %273 = vector.shape_cast %272 : vector<1xf32> to vector<1x1xf32>
    %274 = arith.mulf %18, %18 : vector<8x16xf32>
    %cst_63 = arith.constant dense<0.000000e+00> : vector<8xf32>
    %275 = vector.multi_reduction <add>, %274, %cst_63 [1] : vector<8x16xf32> to vector<8xf32>
    %276 = vector.shape_cast %275 : vector<8xf32> to vector<8x1xf32>
    %cst_64 = arith.constant dense<0.000000e+00> : vector<1xf32>
    %277 = vector.multi_reduction <add>, %276, %cst_64 [0] : vector<8x1xf32> to vector<1xf32>
    %278 = vector.shape_cast %277 : vector<1xf32> to vector<1x1xf32>
    %279 = arith.addf %273, %278 : vector<1x1xf32>
    %280 = arith.mulf %123, %123 : vector<8x16xf32>
    %cst_65 = arith.constant dense<0.000000e+00> : vector<8xf32>
    %281 = vector.multi_reduction <add>, %280, %cst_65 [1] : vector<8x16xf32> to vector<8xf32>
    %282 = vector.shape_cast %281 : vector<8xf32> to vector<8x1xf32>
    %cst_66 = arith.constant dense<0.000000e+00> : vector<1xf32>
    %283 = vector.multi_reduction <add>, %282, %cst_66 [0] : vector<8x1xf32> to vector<1xf32>
    %284 = vector.shape_cast %283 : vector<1xf32> to vector<1x1xf32>
    %285 = arith.addf %279, %284 : vector<1x1xf32>
    %286 = arith.mulf %202, %202 : vector<8x16xf32>
    %cst_67 = arith.constant dense<0.000000e+00> : vector<8xf32>
    %287 = vector.multi_reduction <add>, %286, %cst_67 [1] : vector<8x16xf32> to vector<8xf32>
    %288 = vector.shape_cast %287 : vector<8xf32> to vector<8x1xf32>
    %cst_68 = arith.constant dense<0.000000e+00> : vector<1xf32>
    %289 = vector.multi_reduction <add>, %288, %cst_68 [0] : vector<8x1xf32> to vector<1xf32>
    %290 = vector.shape_cast %289 : vector<1xf32> to vector<1x1xf32>
    %291 = arith.addf %285, %290 : vector<1x1xf32>
    %292 = arith.mulf %26, %26 : vector<8x16xf32>
    %cst_69 = arith.constant dense<0.000000e+00> : vector<8xf32>
    %293 = vector.multi_reduction <add>, %292, %cst_69 [1] : vector<8x16xf32> to vector<8xf32>
    %294 = vector.shape_cast %293 : vector<8xf32> to vector<8x1xf32>
    %cst_70 = arith.constant dense<0.000000e+00> : vector<1xf32>
    %295 = vector.multi_reduction <add>, %294, %cst_70 [0] : vector<8x1xf32> to vector<1xf32>
    %296 = vector.shape_cast %295 : vector<1xf32> to vector<1x1xf32>
    %297 = arith.mulf %34, %34 : vector<8x16xf32>
    %cst_71 = arith.constant dense<0.000000e+00> : vector<8xf32>
    %298 = vector.multi_reduction <add>, %297, %cst_71 [1] : vector<8x16xf32> to vector<8xf32>
    %299 = vector.shape_cast %298 : vector<8xf32> to vector<8x1xf32>
    %cst_72 = arith.constant dense<0.000000e+00> : vector<1xf32>
    %300 = vector.multi_reduction <add>, %299, %cst_72 [0] : vector<8x1xf32> to vector<1xf32>
    %301 = vector.shape_cast %300 : vector<1xf32> to vector<1x1xf32>
    %302 = arith.addf %296, %301 : vector<1x1xf32>
    %303 = math.sqrt %291 : vector<1x1xf32>
    %304 = math.sqrt %302 : vector<1x1xf32>
    %305 = arith.addf %303, %304 : vector<1x1xf32>
    %cst_73 = arith.constant 9.99999974E-5 : f32
    %306 = vector.broadcast %cst_73 : f32 to vector<1x1xf32>
    %307 = arith.mulf %306, %305 : vector<1x1xf32>
    %c0_74 = arith.constant 0 : index
    %c0_75 = arith.constant 0 : index
    %308 = vector.load %arg6[%c0_74, %c0_75] : memref<1x1xf32, #tpu.memory_space<vmem>>, vector<1x1xf32>
    tpu.vector_store %arg6[%c0_74, %c0_75], %307 {strides = array<i32>} : memref<1x1xf32, #tpu.memory_space<vmem>>, vector<1x1xf32>,
    return
  }
}

</mosaic_0001>

<bundles_post_ra>
// kernel: forward.1
= control target key start
LH: loop header
LB: loop body
LE: loop exit
PB: predicated region body
PF: predicated region fallthrough
CT: control target
= control target key end

     0   :  { %12 = vsyncpa [#allocation3], 0  ;;  %v1028_v1 = vmov 8   ;;  %v1029_v2 = vmov 0   ;;  %v1030_v3 = vmov 0.0   ;;  %s1446_s0 = inlined_call_operand.vmem [shape: s32[8,2], index: 0, kind: input, shape index: {}]   ;;  %s1447_s1 = inlined_call_operand.vmem [shape: s32[8,2], index: 1, kind: input, shape index: {}]   ;;  %s1448_s2 = inlined_call_operand.vmem [shape: s32[8,16], index: 2, kind: input, shape index: {}]   ;;  %s1449_s3 = inlined_call_operand.vmem [shape: f32[232,16], index: 3, kind: input, shape index: {}]   ;;  %s1450_s4 = inlined_call_operand.vmem [shape: f32[272,32], index: 4, kind: input, shape index: {}]   ;;  %s1451_s5 = inlined_call_operand.hbm [shape: f32[8,8], index: 5, kind: output, shape index: {0}]   ;;  %s1452_s6 = inlined_call_operand.hbm [shape: f32[1,1], index: 6, kind: output, shape index: {1}]  }
   0x1   :  { %v1085_v0 = vld [vmem:[%s1448_s2] sm:$0xff]  ;;  %931 = vset.pattern.permute.xlu0 %v1028_v1  ;;  %933 = vset.pattern.permute.xlu1 %v1029_v2 }
   0x2   :  { %vm178_vm0 = vcmp.ne.s32.totalorder %v1085_v0, 0  ;;  %201 = vperm.xlu1 %933, %v1085_v0   ;;  %322 = vperm.xlu0 %931, %v1085_v0  }
   0x3   :  { %v1092_v4 = vsel %vm178_vm0, 1.0, %v1030_v3  ;;  %935 = vset.pattern.permute.xlu2 %v1029_v2 }
   0x4   :  { %208 = vperm.xlu2 %935, %v1092_v4  }
   0x5   :  { %13 = vsyncpa [#allocation5], 0  ;;  %v1031_v5 = vmov 1   ;;  %v1032_v6 = vmov 9   ;;  %v1033_v7 = vmov 10   ;;  %v1034_v8 = vmov 2  }
   0x6   :  { %v1035_v9 = vmov 11   ;;  %v1036_v10 = vmov 4   ;;  %v1037_v11 = vmov 3   ;;  %v1038_v12 = vmov 5   ;;  %v25_v14 = vld [vmem:[%s1447_s1] sm:$0xff]  ;;  %v152_v32 = vld [vmem:[%s1449_s3 + $0xd8] sm:$0xff] }
   0x7   :  { %v1039_v13 = vmov 12   ;;  %v1040_v15 = vmov 6   ;;  %v1041_v16 = vmov 13   ;;  %v24_v17 = vld [vmem:[%s1446_s0] sm:$0xff]  ;;  %v1042_v18 = vmov 15   ;;  %v151_v36 = vld [vmem:[%s1449_s3 + $0xd0] sm:$0xff] }
   0x8   :  { %v1043_v19 = vmov 14   ;;  %v1044_v20 = vmov 7   ;;  %v27_v23 = vlaneseq  ;;  %v153_v31 = vld [vmem:[%s1449_s3 + $0xe0] sm:$0xff]  ;;  %v150_v37 = vld [vmem:[%s1449_s3 + $0xc8] sm:$0xff]  ;;  %v75_v43 = vld [vmem:[%s1449_s3 + $0x50] sm:$0xff]  ;;  %vm76_vm6 = vcmask 261120  }
   0x9   :  { %169 = vmatpush.msra.mxu3 %v153_v31  ;;  %92 = vmatpush.msra.mxu1 %v75_v43  ;;  %v149_v47 = vld [vmem:[%s1449_s3 + $0xc0] sm:$0xff]  ;;  %v74_v48 = vld [vmem:[%s1449_s3 + $0x48] sm:$0xff]  ;;  %v72_v51 = vld [vmem:[%s1449_s3 + $0x38] sm:$0xff]  ;;  %vm181_vm9 = vcmask 64512   ;;  %vm154_vm10 = vcmask 326656   ;;  %vm119_vm12 = vcmask 850944  }
   0xa   :  { %934 = vset.pattern.permute.xlu1 %v1031_v5  ;;  %932 = vset.pattern.permute.xlu0 %v1032_v6  ;;  %v1125_v25 = vand.u32 127, %v27_v23  ;;  %v73_v50 = vld [vmem:[%s1449_s3 + $0x40] sm:$0xff]  ;;  %v118_v56 = vld [vmem:[%s1449_s3 + $0xb8] sm:$0xff]  ;;  %v117_v58 = vld [vmem:[%s1449_s3 + $0xb0] sm:$0xff]  ;;  %s859_s18 = sshll.u32 %s1452_s6, 4  ;;  %s1046_s19 = smov [#allocation2]   ;;  %s860_s18 = int_to_ptr.hbm [resolvable:$true] %s859_s18 }
   0xb   :  { %214 = vperm.xlu1 %934, %v1085_v0   ;;  %330 = vperm.xlu0 %932, %v1085_v0   ;;  %v116_v59 = vld [vmem:[%s1449_s3 + $0xa8] sm:$0xff]  ;;  %v41_v60 = vld [vmem:[%s1449_s3 + $0x30] sm:$0xff]  ;;  %v115_v61 = vld [vmem:[%s1449_s3 + $0xa0] sm:$0xff]  ;;  %s846_s20 = sshll.u32 %s1046_s19, 4  ;;  %s848_s2 = sshll.u32 %s1451_s5, 4  ;;  %s847_s20 = int_to_ptr.vmem [resolvable:$true] %s846_s20  ;;  %s849_s2 = int_to_ptr.hbm [resolvable:$true] %s848_s2 }
   0xc   :  { %936 = vset.pattern.permute.xlu2 %v1031_v5  ;;  %170 = vmatpush.msra.mxu3 %v152_v32  ;;  %v114_v63 = vld [vmem:[%s1449_s3 + $0x98] sm:$0xff]  ;;  %v113_v1 = vld [vmem:[%s1449_s3 + $0x90] sm:$0xff]  ;;  %v112_v6 = vld [vmem:[%s1449_s3 + $0x88] sm:$0xff] }
   0xd   :  { %220 = vperm.xlu2 %936, %v1092_v4   ;;  %93 = vmatpush.msra.mxu1 %v74_v48  ;;  %v106_v23 = vld [vmem:[%s1449_s3 + $0x58] sm:$0xff] }
   0xe   :  { %171 = vmatpush.msra.mxu3 %v151_v36  ;;  %126 = vmatpush.msra.mxu2 %v118_v56 }
   0xf   :  { %94 = vmatpush.msra.mxu1 %v73_v50  ;;  %55 = vmatpush.msra.mxu0 %v41_v60 }
  0x10   :  { %172 = vmatpush.msra.mxu3 %v150_v37  ;;  %127 = vmatpush.msra.mxu2 %v117_v58 }
  0x11   :  { %95 = vmatpush.msra.mxu1 %v72_v51 }
  0x12   :  { %173 = vmatpush.msra.mxu3 %v149_v47  ;;  %128 = vmatpush.msra.mxu2 %v116_v59 }
  0x13   :  { %937 = vset.pattern.permute.xlu1 %v1033_v7  ;;  %939 = vset.pattern.permute.xlu0 %v1034_v8 }
  0x14   :  { %338 = vperm.xlu1 %937, %v1085_v0   ;;  %232 = vperm.xlu0 %939, %v1092_v4  }
  0x15   :  { %938 = vset.pattern.permute.xlu2 %v1034_v8  ;;  %399 = vmatpush.msrb.mxu3 %v153_v31  ;;  %v38_v8 = vld [vmem:[%s1449_s3 + $0x18] sm:$0xff] }
  0x16   :  { %226 = vperm.xlu2 %938, %v1085_v0   ;;  %303 = vmatpush.msrb.mxu1 %v118_v56 }
  0x17   :  { %400 = vmatpush.msrb.mxu3 %v152_v32  ;;  %129 = vmatpush.msra.mxu2 %v115_v61 }
  0x18   :  { %304 = vmatpush.msrb.mxu1 %v117_v58 }
  0x19   :  { %401 = vmatpush.msrb.mxu3 %v151_v36  ;;  %130 = vmatpush.msra.mxu2 %v114_v63 }
  0x1a   :  { %305 = vmatpush.msrb.mxu1 %v116_v59 }
  0x1b   :  { %402 = vmatpush.msrb.mxu3 %v150_v37  ;;  %131 = vmatpush.msra.mxu2 %v113_v1 }
  0x1c   :  { %940 = vset.pattern.permute.xlu1 %v1035_v9  ;;  %944 = vset.pattern.permute.xlu0 %v1036_v10  ;;  %v111_v9 = vld [vmem:[%s1449_s3 + $0x80] sm:$0xff] }
  0x1d   :  { %346 = vperm.xlu1 %940, %v1085_v0   ;;  %250 = vperm.xlu0 %944, %v1085_v0  }
  0x1e   :  { %941 = vset.pattern.permute.xlu2 %v1037_v11  ;;  %403 = vmatpush.msrb.mxu3 %v149_v47 }
  0x1f   :  { %238 = vperm.xlu2 %941, %v1085_v0   ;;  %306 = vmatpush.msrb.mxu1 %v115_v61 }
  0x20   :  { %132 = vmatpush.msra.mxu2 %v112_v6 }
  0x21   :  { %307 = vmatpush.msrb.mxu1 %v114_v63 }
  0x22   :  { %133 = vmatpush.msra.mxu2 %v111_v9 }
  0x23   :  { %308 = vmatpush.msrb.mxu1 %v113_v1 }
  0x25   :  { %942 = vset.pattern.permute.xlu1 %v1037_v11  ;;  %949 = vset.pattern.permute.xlu0 %v1038_v12 }
  0x26   :  { %244 = vperm.xlu1 %942, %v1092_v4   ;;  %262 = vperm.xlu0 %949, %v1085_v0  }
  0x27   :  { %943 = vset.pattern.permute.xlu2 %v1039_v13  ;;  %v110_v13 = vld [vmem:[%s1449_s3 + $0x78] sm:$0xff]  ;;  %309 = vmatpush.msrb.mxu1 %v112_v6 }
  0x28   :  { %354 = vperm.xlu2 %943, %v1085_v0   ;;  %134 = vmatpush.msra.mxu2 %v110_v13 }
  0x29   :  { %310 = vmatpush.msrb.mxu1 %v111_v9  ;;  %v411_v9 = vld [vmem:[%s1450_s4 + $0x8] sm:$0xff] }
  0x2b   :  { %311 = vmatpush.msrb.mxu1 %v110_v13  ;;  %v517_v13 = vld [vmem:[%s1450_s4 + $0x48] sm:$0xff] }
  0x2e   :  { %945 = vset.pattern.permute.xlu1 %v1031_v5  ;;  %954 = vset.pattern.permute.xlu0 %v1040_v15 }
  0x2f   :  { %144 = vperm.xlu1 %945, %v25_v14   ;;  %280 = vperm.xlu0 %954, %v1092_v4  }
  0x30   :  { %946 = vset.pattern.permute.xlu2 %v1036_v10 }
  0x31   :  { %256 = vperm.xlu2 %946, %v1092_v4  }
  0x37   :  { %947 = vset.pattern.permute.xlu1 %v1041_v16  ;;  %959 = vset.pattern.permute.xlu0 %v1042_v18 }
  0x38   :  { %362 = vperm.xlu1 %947, %v1085_v0  }
  0x39   :  { %948 = vset.pattern.permute.xlu2 %v1031_v5  ;;  %v39_v5 = vld [vmem:[%s1449_s3 + $0x20] sm:$0xff] }
  0x3a   :  { %67 = vperm.xlu2 %948, %v24_v17  }
  0x40   :  { %950 = vset.pattern.permute.xlu1 %v1038_v12  ;;  %v37_v12 = vld [vmem:[%s1449_s3 + $0x10] sm:$0xff] }
  0x41   :  { %268 = vperm.xlu1 %950, %v1092_v4  }
  0x42   :  { %951 = vset.pattern.permute.xlu2 %v1043_v19  ;;  %v35_v19 = vld [vmem:[%s1449_s3] sm:$0xff] }
  0x43   :  { %370 = vperm.xlu2 %951, %v1085_v0  }
  0x49   :  { %952 = vset.pattern.permute.xlu1 %v1029_v2 }
  0x4a   :  { %30 = vperm.xlu1 %952, %v24_v17   ;;  %v109_v17 = vld [vmem:[%s1449_s3 + $0x70] sm:$0xff] }
  0x4b   :  { %953 = vset.pattern.permute.xlu2 %v1040_v15  ;;  %v36_v15 = vld [vmem:[%s1449_s3 + $0x8] sm:$0xff]  ;;  %135 = vmatpush.msra.mxu2 %v109_v17 }
  0x4c   :  { %274 = vperm.xlu2 %953, %v1085_v0   ;;  %312 = vmatpush.msrb.mxu1 %v109_v17  ;;  %v490_v17 = vld [vmem:[%s1450_s4 + $0x30] sm:$0xff] }
  0x52   :  { %955 = vset.pattern.permute.xlu1 %v1042_v18 }
  0x53   :  { %378 = vperm.xlu1 %955, %v1085_v0  }
  0x54   :  { %956 = vset.pattern.permute.xlu2 %v1029_v2 }
  0x55   :  { %101 = vperm.xlu2 %956, %v25_v14  }
  0x5b   :  { %957 = vset.pattern.permute.xlu1 %v1044_v20 }
  0x5c   :  { %286 = vperm.xlu1 %957, %v1085_v0   ;;  %v40_v0 = vld [vmem:[%s1449_s3 + $0x28] sm:$0xff] }
  0x5d   :  { %958 = vset.pattern.permute.xlu2 %v1044_v20  ;;  %56 = vmatpush.msra.mxu0 %v40_v0  ;;  %v108_v20 = vld [vmem:[%s1449_s3 + $0x68] sm:$0xff] }
  0x5e   :  { %292 = vperm.xlu2 %958, %v1092_v4   ;;  %v209_v21 = vpop.permute.xlu2 %208  ;;  %136 = vmatpush.msra.mxu2 %v108_v20 }
  0x5f   :  { %57 = vmatpush.msra.mxu0 %v39_v5  ;;  %313 = vmatpush.msrb.mxu1 %v108_v20 }
  0x61   :  { %58 = vmatpush.msra.mxu0 %v38_v8  ;;  %v438_v8 = vld [vmem:[%s1450_s4 + $0x10] sm:$0xff] }
  0x63   :  { %59 = vmatpush.msra.mxu0 %v37_v12  ;;  %v518_v12 = vld [vmem:[%s1450_s4 + $0x50] sm:$0xff] }
  0x65   :  { %60 = vmatpush.msra.mxu0 %v36_v15  ;;  %v491_v15 = vld [vmem:[%s1450_s4 + $0x38] sm:$0xff] }
  0x67   :  { %v221_v22 = vpop.permute.xlu2 %220  ;;  %61 = vmatpush.msra.mxu0 %v35_v19  ;;  %v464_v19 = vld [vmem:[%s1450_s4 + $0x20] sm:$0xff] }
  0x69   :  { %430 = vmatpush.msrb.mxu0 %v411_v9  ;;  %v962_v9 = vld [vmem:[%s1450_s4 + $0x90] ss:$0 sm:$0xff] }
  0x70   :  { %v227_v24 = vpop.permute.xlu2 %226 }
  0x71   :  { %vm228_vm5 = vcmp.eq.s32.totalorder %v227_v24, %v1125_v25 }
  0x72   :  { %v884_v49 = vsel %vm228_vm5, 1.0, %v1030_v3 }
  0x74   :  { %v202_v26 = vpop.permute.xlu1 %201  ;;  %v323_v27 = vpop.permute.xlu0 %322 }
  0x75   :  { %vm203_vm1 = vcmp.eq.s32.totalorder %v202_v26, %v1125_v25  ;;  %vm324_vm2 = vcmp.eq.s32.totalorder %v323_v27, %v1125_v25 }
  0x76   :  { %v882_v28 = vsel %vm203_vm1, 1.0, %v1030_v3  ;;  %v891_v33 = vsel %vm324_vm2, 1.0, %v1030_v3  ;;  %vm42_vm2 = vcmask 457728  }
  0x77   :  { %v211_v29 = vmul.f32 %v882_v28, %v209_v21  ;;  %v327_v40 = vmul.f32 %v891_v33, %v209_v21  ;;  %v182_v21 = vsel %vm181_vm9, %v1092_v4, 0.0 }
  0x78   :  { %183 = vadd.xlane.f32.xlu0 %v182_v21 }
  0x79   :  { %v1129_v30 = vpop.permute.xlu2 %238 }
  0x7a   :  { %vm240_vm7 = vcmp.eq.s32.totalorder %v1129_v30, %v1125_v25 }
  0x7b   :  { %v885_v10 = vsel %vm240_vm7, 1.0, %v1030_v3 }
  0x7d   :  { %v215_v34 = vpop.permute.xlu1 %214  ;;  %v331_v35 = vpop.permute.xlu0 %330 }
  0x7e   :  { %vm216_vm3 = vcmp.eq.s32.totalorder %v215_v34, %v1125_v25  ;;  %vm332_vm4 = vcmp.eq.s32.totalorder %v331_v35, %v1125_v25 }
  0x7f   :  { %v883_v38 = vsel %vm216_vm3, 1.0, %v1030_v3  ;;  %v892_v39 = vsel %vm332_vm4, 1.0, %v1030_v3 }
  0x80   :  { %v223_v41 = vmul.f32 %v883_v38, %v221_v22  ;;  %v335_v42 = vmul.f32 %v892_v39, %v221_v22  ;;  %v107_v22 = vld [vmem:[%s1449_s3 + $0x60] sm:$0xff] }
  0x81   :  { %137 = vmatpush.msra.mxu2 %v107_v22  ;;  %314 = vmatpush.msrb.mxu1 %v107_v22 }
  0x82   :  { %v224_v44 = vadd.f32 %v223_v41, %v211_v29  ;;  %v1153_v45 = vadd.f32 %v335_v42, %v327_v40  ;;  %v1155_v46 = vpop.permute.xlu2 %354 }
  0x83   :  { %138 = vmatpush.msra.mxu2 %v106_v23  ;;  %315 = vmatpush.msrb.mxu1 %v106_v23  ;;  %vm356_vm0 = vcmp.eq.s32.totalorder %v1155_v46, %v1125_v25 }
  0x84   :  { %v895_v37 = vsel %vm356_vm0, 1.0, %v1030_v3 }
  0x85   :  { %509 = vmatpush.msrb.mxu2 %v491_v15 }
  0x86   :  { %v1170_v52 = vpop.permute.xlu1 %338  ;;  %v1172_v53 = vpop.permute.xlu0 %232 }
  0x87   :  { %v235_v54 = vmul.f32 %v884_v49, %v1172_v53  ;;  %vm340_vm14 = vcmp.eq.s32.totalorder %v1170_v52, %v1125_v25  ;;  %510 = vmatpush.msrb.mxu2 %v490_v17  ;;  %v964_v17 = vld [vmem:[%s1450_s4 + $0xb8] ss:$0 sm:$0xff] }
  0x88   :  { %v893_v32 = vsel %vm340_vm14, 1.0, %v1030_v3 }
  0x89   :  { %v236_v55 = vadd.f32 %v235_v54, %v224_v44  ;;  %v343_v34 = vmul.f32 %v893_v32, %v1172_v53 }
  0x8b   :  { %v1178_v57 = vpop.permute.xlu2 %256  ;;  %v344_v38 = vadd.f32 %v343_v34, %v1153_v45 }
  0x8c   :  { %v359_v41 = vmul.f32 %v895_v37, %v1178_v57 }
  0x8f   :  { %v1192_v62 = vpop.permute.xlu1 %346  ;;  %v251_v28 = vpop.permute.xlu0 %250 }
  0x90   :  { %vm348_vm15 = vcmp.eq.s32.totalorder %v1192_v62, %v1125_v25  ;;  %vm252_vm5 = vcmp.eq.s32.totalorder %v251_v28, %v1125_v25 }
  0x91   :  { %v894_v35 = vsel %vm348_vm15, 1.0, %v1030_v3  ;;  %v886_v48 = vsel %vm252_vm5, 1.0, %v1030_v3 }
  0x92   :  { %v259_v54 = vmul.f32 %v886_v48, %v1178_v57  ;;  %v630_v48 = vld [vmem:[%s1450_s4 + $0xc0] sm:$0xff] }
  0x94   :  { %v68_v2 = vpop.permute.xlu2 %67 }
  0x95   :  { %vm69_vm8 = vcmp.eq.s32.totalorder %v68_v2, %v1125_v25 }
  0x96   :  { %v875_v7 = vsel %vm69_vm8, 1.0, %v1030_v3 }
  0x97   :  { %876 = vmatmul.msk.f32.vlgmr.msra.gmra.mxu1 %vm76_vm6, %v875_v7  ;;  %v439_v7 = vld [vmem:[%s1450_s4 + $0x18] sm:$0xff] }
  0x98   :  { %v245_v11 = vpop.permute.xlu1 %244  ;;  %v263_v33 = vpop.permute.xlu0 %262 }
  0x99   :  { %v247_v14 = vmul.f32 %v885_v10, %v245_v11  ;;  %v351_v36 = vmul.f32 %v894_v35, %v245_v11  ;;  %vm264_vm7 = vcmp.eq.s32.totalorder %v263_v33, %v1125_v25  ;;  %v410_v11 = vld [vmem:[%s1450_s4] sm:$0xff] }
  0x9a   :  { %v887_v53 = vsel %vm264_vm7, 1.0, %v1030_v3  ;;  %431 = vmatpush.msrb.mxu0 %v410_v11 }
  0x9b   :  { %v1230_v16 = vadd.f32 %v247_v14, %v236_v55  ;;  %v352_v40 = vadd.f32 %v351_v36, %v344_v38 }
  0x9d   :  { %v371_v18 = vpop.permute.xlu2 %370  ;;  %v360_v47 = vadd.f32 %v359_v41, %v352_v40  ;;  %v260_v62 = vadd.f32 %v259_v54, %v1230_v16  ;;  %v573_v41 = vld [vmem:[%s1450_s4 + $0x88] sm:$0xff] }
  0x9e   :  { %vm372_vm4 = vcmp.eq.s32.totalorder %v371_v18, %v1125_v25  ;;  %v465_v18 = vld [vmem:[%s1450_s4 + $0x28] sm:$0xff]  ;;  %591 = vmatpush.msra.mxu1 %v573_v41 }
  0x9f   :  { %v897_v45 = vsel %vm372_vm4, 1.0, %v1030_v3 }
  0xa1   :  { %v145_v24 = vpop.permute.xlu1 %144  ;;  %v281_v46 = vpop.permute.xlu0 %280 }
  0xa2   :  { %vm146_vm11 = vcmp.eq.s32.totalorder %v145_v24, %v1125_v25  ;;  %v375_v50 = vmul.f32 %v897_v45, %v281_v46  ;;  %v545_v24 = vld [vmem:[%s1450_s4 + $0x60] sm:$0xff]  ;;  %v570_v45 = vld [vmem:[%s1450_s4 + $0x70] sm:$0xff] }
  0xa3   :  { %v879_v26 = vsel %vm146_vm11, 1.0, %v1030_v3 }
  0xa4   :  { %880 = vmatmul.msk.f32.vlgmr.msra.gmra.mxu3 %vm154_vm10, %v879_v26 }
  0xa5   :  { %457 = vmatpush.msra.mxu3 %v439_v7  ;;  %v662_v7 = vld [vmem:[%s1450_s4 + $0xf0] sm:$0xff] }
  0xa6   :  { %v275_v4 = vpop.permute.xlu2 %274 }
  0xa7   :  { %vm276_vm11 = vcmp.eq.s32.totalorder %v275_v4, %v1125_v25  ;;  %458 = vmatpush.msra.mxu3 %v438_v8  ;;  %v661_v8 = vld [vmem:[%s1450_s4 + $0xe8] sm:$0xff] }
  0xa8   :  { %v888_v60 = vsel %vm276_vm11, 1.0, %v1030_v3 }
  0xa9   :  { %v283_v0 = vmul.f32 %v888_v60, %v281_v46  ;;  %v632_v46 = vld [vmem:[%s1450_s4 + $0xd0] sm:$0xff] }
  0xaa   :  { %v363_v27 = vpop.permute.xlu1 %362 }
  0xab   :  { %vm364_vm1 = vcmp.eq.s32.totalorder %v363_v27, %v1125_v25  ;;  %v544_v27 = vld [vmem:[%s1450_s4 + $0x58] sm:$0xff] }
  0xac   :  { %v896_v43 = vsel %vm364_vm1, 1.0, %v1030_v3 }
  0xaf   :  { %v102_v29 = vpop.permute.xlu2 %101 }
  0xb0   :  { %vm103_vm13 = vcmp.eq.s32.totalorder %v102_v29, %v1125_v25 }
  0xb1   :  { %v877_v30 = vsel %vm103_vm13, 1.0, %v1030_v3 }
  0xb2   :  { %878 = vmatmul.msk.f32.vlgmr.msra.gmra.mxu2 %vm119_vm12, %v877_v30 }
  0xb3   :  { %v269_v31 = vpop.permute.xlu1 %268 }
  0xb4   :  { %v367_v44 = vmul.f32 %v896_v43, %v269_v31  ;;  %v271_v59 = vmul.f32 %v887_v53, %v269_v31  ;;  %v571_v43 = vld [vmem:[%s1450_s4 + $0x78] sm:$0xff] }
  0xb6   :  { %v368_v49 = vadd.f32 %v367_v44, %v360_v47  ;;  %v272_v63 = vadd.f32 %v271_v59, %v260_v62  ;;  %v633_v44 = vld [vmem:[%s1450_s4 + $0xd8] sm:$0xff]  ;;  %v631_v47 = vld [vmem:[%s1450_s4 + $0xc8] sm:$0xff] }
  0xb8   :  { %v293_v52 = vpop.permute.xlu2 %292  ;;  %v376_v56 = vadd.f32 %v375_v50, %v368_v49  ;;  %v284_v2 = vadd.f32 %v283_v0, %v272_v63  ;;  %v960_v49 = vld [vmem:[%s1450_s4 + $0x40] ss:$0 sm:$0xff]  ;;  %v604_v0 = vld [vmem:[%s1450_s4 + $0xb0] sm:$0xff] }
  0xb9   :  { %622 = vmatpush.msra.mxu2 %v604_v0 }
  0xbc   :  { %v31_v39 = vpop.permute.xlu1 %30 }
  0xbd   :  { %vm32_vm3 = vcmp.eq.s32.totalorder %v31_v39, %v1125_v25 }
  0xbe   :  { %v873_v42 = vsel %vm32_vm3, 1.0, %v1030_v3 }
  0xbf   :  { %874 = vmatmul.msk.f32.vlgmr.msra.gmra.mxu0 %vm42_vm2, %v873_v42  ;;  %v572_v42 = vld [vmem:[%s1450_s4 + $0x80] sm:$0xff] }
  0xc0   :  { %483 = vmatpush.msra.mxu0 %v465_v18  ;;  %592 = vmatpush.msra.mxu1 %v572_v42 }
  0xc2   :  { %484 = vmatpush.msra.mxu0 %v464_v19  ;;  %593 = vmatpush.msra.mxu1 %v571_v43 }
  0xc4   :  { %594 = vmatpush.msra.mxu1 %v570_v45 }
  0xc5   :  { %v379_v51 = vpop.permute.xlu1 %378 }
  0xc6   :  { %vm380_vm8 = vcmp.eq.s32.totalorder %v379_v51, %v1125_v25 }
  0xc7   :  { %v898_v55 = vsel %vm380_vm8, 1.0, %v1030_v3 }
  0xc8   :  { %v383_v58 = vmul.f32 %v898_v55, %v293_v52 }
  0xca   :  { %v384_v61 = vadd.f32 %v383_v58, %v376_v56  ;;  %v961_v56 = vld [vmem:[%s1450_s4 + $0x68] ss:$0 sm:$0xff] }
  0xcc   :  { %899 = vmatmul.msk.f32.vlgmr.msrb.gmra.mxu3 %vm154_vm10, %v384_v61  ;;  %vm412_vm10 = vcmask 130048  }
  0xcd   :  { %536 = vmatpush.msrb.mxu3 %v518_v12  ;;  %v963_v12 = vld [vmem:[%s1450_s4 + $0xe0] ss:$0 sm:$0xff] }
  0xce   :  { %v287_v1 = vpop.permute.xlu1 %286 }
  0xcf   :  { %vm288_vm13 = vcmp.eq.s32.totalorder %v287_v1, %v1125_v25  ;;  %537 = vmatpush.msrb.mxu3 %v517_v13  ;;  %v603_v1 = vld [vmem:[%s1450_s4 + $0xa8] sm:$0xff] }
  0xd0   :  { %v889_v57 = vsel %vm288_vm13, 1.0, %v1030_v3  ;;  %623 = vmatpush.msra.mxu2 %v603_v1 }
  0xd1   :  { %v295_v5 = vmul.f32 %v889_v57, %v293_v52  ;;  %v602_v57 = vld [vmem:[%s1450_s4 + $0xa0] sm:$0xff] }
  0xd2   :  { %624 = vmatpush.msra.mxu2 %v602_v57 }
  0xd3   :  { %v296_v6 = vadd.f32 %v295_v5, %v284_v2  ;;  %v601_v2 = vld [vmem:[%s1450_s4 + $0x98] sm:$0xff]  ;;  %v664_v5 = vld [vmem:[%s1450_s4 + $0x100] sm:$0xff] }
  0xd4   :  { %625 = vmatpush.msra.mxu2 %v601_v2 }
  0xd5   :  { %890 = vmatmul.msk.f32.vlgmr.msrb.gmra.mxu1 %vm119_vm12, %v296_v6  ;;  %v663_v6 = vld [vmem:[%s1450_s4 + $0xf8] sm:$0xff] }
  0xeb   :  { %v184_v14 = vpop.xlane.xlu0 %183 }
  0xec   :  { %v185_v16 = vmax.f32 %v184_v14, 1.0 }
  0xee   :  { %966 = vrcp.f32 %v185_v16  ;;  %vm191_vm12 = vweird.f32 %v185_v16  ;;  %v197_v31 = vand.u32 2147483648, %v185_v16  ;;  %v195_v33 = vand.u32 2147483647, %v185_v16 }
  0xf0   :  { %v198_v34 = vor.u32 1.1754944e-38, %v197_v31  ;;  %vm196_vm0 = vcmp.eq.f32.partialorder %v195_v33, 8.507059e+37 }
  0xf4   :  { %v967_v23 = vpop.eup %966 }
  0xf5   :  { %v187_v4 = vmul.f32 %v967_v23, %v185_v16  ;;  %vm192_vm14 = vweird.f32 %v967_v23 }
  0xf6   :  { %vm193_vm15 = vmor %vm191_vm12, %vm192_vm14 }
  0xf7   :  { %v188_v28 = vsub.f32 1.0, %v187_v4 }
  0xf9   :  { %v189_v29 = vmul.f32 %v967_v23, %v188_v28 }
  0xfb   :  { %v190_v32 = vadd.f32 %v967_v23, %v189_v29 }
  0xfd   :  { %v194_v35 = vsel %vm193_vm15, %v967_v23, %v190_v32 }
  0xfe   :  { %v199_v36 = vsel %vm196_vm0, %v198_v34, %v194_v35 }
 0x114   :  { %v97_v3 = vpop.f32.mrf.mxu1 }
 0x115   :  { %v759_v25 = vmul.f32 %v97_v3, %v97_v3  ;;  %901 = vmatmul.msk.f32.vlgmr.msra.gmra.mxu3 %vm412_vm10, %v97_v3 }
 0x116   :  { %651 = vmatpush.msra.mxu3 %v633_v44 }
 0x117   :  { %v760_v10 = vsel %vm412_vm10, %v759_v25, 0.0 }
 0x118   :  { %761 = vadd.xlane.f32.xlu0 %v760_v10  ;;  %652 = vmatpush.msra.mxu3 %v632_v46 }
 0x11a   :  { %653 = vmatpush.msra.mxu3 %v631_v47 }
 0x11c   :  { %654 = vmatpush.msra.mxu3 %v630_v48 }
 0x127   :  { %v1331_v30 = vpop.f32.mrf.mxu3 }
 0x135   :  { %v140_v20 = vpop.f32.mrf.mxu2 }
 0x136   :  { %v792_v21 = vmul.f32 %v140_v20, %v140_v20  ;;  %904 = vmatmul.msk.f32.vlgmr.msrb.gmra.mxu3 %vm412_vm10, %v140_v20  ;;  %v965_v20 = vld [vmem:[%s1450_s4 + $0x108] ss:$0 sm:$0xff]  ;;  %s1045_s4 = smov [#allocation4]  }
 0x137   :  { %s857_s15 = sshll.u32 %s1045_s4, 4  ;;  %s858_s15 = int_to_ptr.vmem [resolvable:$true] %s857_s15 }
 0x138   :  { %v793_v22 = vsel %vm412_vm10, %v792_v21, 0.0 }
 0x139   :  { %794 = vadd.xlane.f32.xlu0 %v793_v22 }
 0x13c   :  { %v1324_v26 = vpop.f32.mrf.mxu0 }
 0x13d   :  { %900 = vmatmul.msk.f32.vlgmr.msrb.gmra.mxu0 %vm412_vm10, %v1324_v26 }
 0x13e   :  { %563 = vmatpush.msrb.mxu0 %v545_v24 }
 0x140   :  { %564 = vmatpush.msrb.mxu0 %v544_v27  ;;  %v749_v27 = vmul.f32 %v1324_v26, %v1324_v26  ;;  %v802_v26 = vmul.f32 %v1331_v30, %v1331_v30 }
 0x142   :  { %v750_v29 = vsel %vm412_vm10, %v749_v27, 0.0  ;;  %v803_v35 = vsel %vm412_vm10, %v802_v26, 0.0 }
 0x14f   :  { %v405_v37 = vpop.f32.mrf.mxu3 }
 0x150   :  { %v1333_v38 = vmul.f32 %v405_v37, %v199_v36 }
 0x152   :  { %v317_v39 = vpop.f32.mrf.mxu1  ;;  %903 = vmatmul.msk.f32.vlgmr.msrb.gmra.mxu2 %vm412_vm10, %v1333_v38  ;;  %v781_v32 = vmul.f32 %v1333_v38, %v1333_v38 }
 0x153   :  { %v1337_v40 = vmul.f32 %v317_v39, %v199_v36 }
 0x154   :  { %v782_v34 = vsel %vm412_vm10, %v781_v32, 0.0 }
 0x155   :  { %902 = vmatmul.msk.f32.vlgmr.msra.gmra.mxu0 %vm412_vm10, %v1337_v40  ;;  %v770_v31 = vmul.f32 %v1337_v40, %v1337_v40 }
 0x156   :  { %682 = vmatpush.msra.mxu0 %v664_v5 }
 0x157   :  { %v771_v33 = vsel %vm412_vm10, %v770_v31, 0.0 }
 0x158   :  { %683 = vmatpush.msra.mxu0 %v663_v6 }
 0x15a   :  { %684 = vmatpush.msra.mxu0 %v662_v7 }
 0x15c   :  { %685 = vmatpush.msra.mxu0 %v661_v8 }
 0x15d   :  { %905 = vmatmul.msk.f32.vlgmr.msrb.gmra.mxu0 %vm412_vm10, %v1331_v30 }
 0x18b   :  { %v762_v36 = vpop.xlane.xlu0 %761 }
 0x18c   :  { %v763_v39 = vrot.slane %v762_v36, 4 }
 0x18e   :  { %v764_v40 = vadd.f32 %v763_v39, %v762_v36 }
 0x190   :  { %v765_v46 = vrot.slane %v764_v40, 2 }
 0x198   :  { %v460_v52 = vpop.f32.mrf.mxu3 }
 0x1ac   :  { %v795_v43 = vpop.xlane.xlu0 %794 }
 0x1ad   :  { %v796_v30 = vrot.slane %v795_v43, 4 }
 0x1b9   :  { %v539_v59 = vpop.f32.mrf.mxu3 }
 0x1ba   :  { %v433_v50 = vpop.f32.mrf.mxu0  ;;  %v543_v61 = vadd.f32 %v961_v56, %v539_v59 }
 0x1bb   :  { %v437_v51 = vadd.f32 %v960_v49, %v433_v50 }
 0x1bd   :  { %v463_v53 = vadd.f32 %v460_v52, %v437_v51  ;;  %v766_v51 = vadd.f32 %v765_v46, %v764_v40 }
 0x1d2   :  { %v486_v54 = vpop.f32.mrf.mxu0 }
 0x1d3   :  { %v489_v55 = vadd.f32 %v486_v54, %v463_v53 }
 0x1d5   :  { %v512_v58 = vpop.f32.mrf.mxu2 }
 0x1d6   :  { %v515_v60 = vadd.f32 %v512_v58, %v489_v55  ;;  %v797_v58 = vadd.f32 %v796_v30, %v795_v43 }
 0x1d8   :  { %906 = vmatmul.msk.f32.vlgmr.msra.gmra.mxu1 %vm76_vm6, %v515_v60  ;;  %v798_v6 = vrot.slane %v797_v58, 2 }
 0x1da   :  { %v566_v62 = vpop.f32.mrf.mxu0 }
 0x1db   :  { %v569_v63 = vadd.f32 %v566_v62, %v543_v61 }
 0x1dd   :  { %908 = vmatmul.msk.f32.vlgmr.msra.gmra.mxu3 %vm76_vm6, %v569_v63 }
 0x255   :  { %v596_v3 = vpop.f32.mrf.mxu1 }
 0x256   :  { %v597_v25 = vadd.f32 %v962_v9, %v596_v3 }
 0x258   :  { %v599_v10 = vmax.f32 %v597_v25, 0.0 }
 0x25a   :  { %v600_v11 = vadd.f32 %v599_v10, %v515_v60 }
 0x25c   :  { %907 = vmatmul.msk.f32.vlgmr.msra.gmra.mxu2 %vm76_vm6, %v600_v11 }
 0x260   :  { %v656_v13 = vpop.f32.mrf.mxu3 }
 0x261   :  { %v657_v14 = vadd.f32 %v963_v12, %v656_v13 }
 0x263   :  { %v659_v15 = vmax.f32 %v657_v14, 0.0 }
 0x265   :  { %v660_v16 = vadd.f32 %v659_v15, %v569_v63  ;;  %v767_v63 = vrot.slane %v766_v51, 1 }
 0x267   :  { %909 = vmatmul.msk.f32.vlgmr.msra.gmra.mxu0 %vm76_vm6, %v660_v16  ;;  %v768_v25 = vadd.f32 %v767_v63, %v766_v51  ;;  %v799_v16 = vadd.f32 %v798_v6, %v797_v58 }
 0x2df   :  { %v627_v18 = vpop.f32.mrf.mxu2 }
 0x2e0   :  { %v1410_v19 = vadd.f32 %v964_v17, %v627_v18 }
 0x2e2   :  { %v690_v21 = vmul.f32 %v1410_v19, %v1410_v19 }
 0x2e4   :  { %v687_v22 = vpop.f32.mrf.mxu0  ;;  %v691_v23 = vsel %vm412_vm10, %v690_v21, 0.0 }
 0x2e5   :  { %v1418_v24 = vadd.f32 %v965_v20, %v687_v22  ;;  %692 = vadd.xlane.f32.xlu2 %v691_v23 }
 0x2e7   :  { %v706_v4 = vmul.f32 %v1418_v24, %v1418_v24 }
 0x2e9   :  { %v707_v28 = vsel %vm412_vm10, %v706_v4, 0.0 }
 0x2ea   :  { %708 = vadd.xlane.f32.xlu1 %v707_v28 }
 0x2ed   :  { %751 = vadd.xlane.f32.xlu2 %v750_v29 }
 0x2f2   :  { %772 = vadd.xlane.f32.xlu1 %v771_v33  ;;  %v800_v33 = vrot.slane %v799_v16, 1 }
 0x2f5   :  { %783 = vadd.xlane.f32.xlu2 %v782_v34 }
 0x2fa   :  { %804 = vadd.xlane.f32.xlu1 %v803_v35 }
 0x358   :  { %v693_v37 = vpop.xlane.xlu2 %692 }
 0x359   :  { %v694_v41 = vmax.f32 %v693_v37, 1e-24  ;;  %v801_v37 = vadd.f32 %v800_v33, %v799_v16 }
 0x35b   :  { %968 = vrsqrt.f32 %v694_v41  ;;  %vm701_vm3 = vweird.f32 %v694_v41 }
 0x35d   :  { %v709_v42 = vpop.xlane.xlu1 %708 }
 0x35e   :  { %v710_v38 = vmax.f32 %v709_v42, 1e-24 }
 0x360   :  { %970 = vrsqrt.f32 %v710_v38  ;;  %v752_v44 = vpop.xlane.xlu2 %751  ;;  %vm717_vm2 = vweird.f32 %v710_v38 }
 0x361   :  { %v969_v45 = vpop.eup %968  ;;  %v753_v47 = vrot.slane %v752_v44, 4 }
 0x362   :  { %v696_v48 = vmul.f32 %v969_v45, %v694_v41  ;;  %vm702_vm1 = vweird.f32 %v969_v45 }
 0x363   :  { %v754_v49 = vadd.f32 %v753_v47, %v752_v44  ;;  %vm703_vm5 = vmor %vm701_vm3, %vm702_vm1 }
 0x364   :  { %v697_v50 = vmul.f32 %v969_v45, %v696_v48 }
 0x365   :  { %v755_v52 = vrot.slane %v754_v49, 2  ;;  %v773_v53 = vpop.xlane.xlu1 %772 }
 0x366   :  { %v971_v54 = vpop.eup %970  ;;  %v698_v55 = vmul.f32 0.5, %v697_v50  ;;  %v774_v56 = vrot.slane %v773_v53, 4 }
 0x367   :  { %v712_v59 = vmul.f32 %v971_v54, %v710_v38  ;;  %v756_v60 = vadd.f32 %v755_v52, %v754_v49  ;;  %vm718_vm6 = vweird.f32 %v971_v54 }
 0x368   :  { %v775_v61 = vadd.f32 %v774_v56, %v773_v53  ;;  %v784_v62 = vpop.xlane.xlu2 %783  ;;  %v699_v2 = vsub.f32 1.5, %v698_v55  ;;  %vm719_vm4 = vmor %vm717_vm2, %vm718_vm6 }
 0x369   :  { %v713_v0 = vmul.f32 %v971_v54, %v712_v59  ;;  %v757_v1 = vrot.slane %v756_v60, 1  ;;  %v785_v57 = vrot.slane %v784_v62, 4 }
 0x36a   :  { %v776_v5 = vrot.slane %v775_v61, 2  ;;  %v700_v13 = vmul.f32 %v969_v45, %v699_v2 }
 0x36b   :  { %v714_v7 = vmul.f32 0.5, %v713_v0  ;;  %v786_v8 = vadd.f32 %v785_v57, %v784_v62  ;;  %v758_v9 = vadd.f32 %v757_v1, %v756_v60 }
 0x36c   :  { %v777_v3 = vadd.f32 %v776_v5, %v775_v61  ;;  %v704_v27 = vsel %vm703_vm5, %v969_v45, %v700_v13 }
 0x36d   :  { %v715_v10 = vsub.f32 1.5, %v714_v7  ;;  %v787_v11 = vrot.slane %v786_v8, 2  ;;  %v805_v12 = vpop.xlane.xlu1 %804  ;;  %v769_v20 = vadd.f32 %v768_v25, %v758_v9  ;;  %v705_v26 = vmul.f32 %v704_v27, %v1410_v19 }
 0x36e   :  { %v778_v14 = vrot.slane %v777_v3, 1  ;;  %v806_v15 = vrot.slane %v805_v12, 4 }
 0x36f   :  { %v716_v17 = vmul.f32 %v971_v54, %v715_v10  ;;  %v788_v18 = vadd.f32 %v787_v11, %v786_v8 }
 0x370   :  { %v779_v21 = vadd.f32 %v778_v14, %v777_v3  ;;  %v807_v22 = vadd.f32 %v806_v15, %v805_v12 }
 0x371   :  { %v720_v23 = vsel %vm719_vm4, %v971_v54, %v716_v17  ;;  %v789_v4 = vrot.slane %v788_v18, 1 }
 0x372   :  { %v721_v28 = vmul.f32 %v720_v23, %v1418_v24  ;;  %v780_v29 = vadd.f32 %v779_v21, %v769_v20  ;;  %v808_v31 = vrot.slane %v807_v22, 2 }
 0x373   :  { %v790_v32 = vadd.f32 %v789_v4, %v788_v18 }
 0x374   :  { %v809_v34 = vadd.f32 %v808_v31, %v807_v22  ;;  %910 = vmatpush.xpose.msk.msrb.mxu1 %vm412_vm10, %v721_v28 }
 0x375   :  { %v791_v35 = vadd.f32 %v790_v32, %v780_v29 }
 0x376   :  { %v810_v36 = vrot.slane %v809_v34, 1 }
 0x377   :  { %972 = vrsqrt.f32 %v791_v35  ;;  %911 = vmatmul.msk.f32.vlgmr.msrb.gmra.mxu1 %vm412_vm10, %v705_v26  ;;  %vm820_vm7 = vcmp.eq.f32.partialorder %v791_v35, inf  ;;  %v823_v52 = vand.u32 2147483648, %v791_v35  ;;  %vm822_vm11 = vcmp.eq.f32.partialorder %v791_v35, 0.0 }
 0x378   :  { %v811_v39 = vadd.f32 %v810_v36, %v809_v34  ;;  %vm839_vm10 = vcmask 0  }
 0x37a   :  { %v812_v41 = vadd.f32 %v811_v39, %v801_v37 }
 0x37c   :  { %974 = vrsqrt.f32 %v812_v41  ;;  %vm832_vm8 = vcmp.eq.f32.partialorder %v812_v41, inf  ;;  %v835_v53 = vand.u32 2147483648, %v812_v41  ;;  %vm834_vm13 = vcmp.eq.f32.partialorder %v812_v41, 0.0 }
 0x37d   :  { %v973_v40 = vpop.eup %972 }
 0x37e   :  { %v814_v24 = vmul.f32 %v973_v40, %v791_v35 }
 0x380   :  { %v815_v42 = vmul.f32 %v973_v40, %v814_v24 }
 0x382   :  { %v975_v38 = vpop.eup %974  ;;  %v816_v43 = vmul.f32 0.5, %v815_v42 }
 0x383   :  { %v826_v44 = vmul.f32 %v975_v38, %v812_v41 }
 0x384   :  { %v817_v45 = vsub.f32 1.5, %v816_v43 }
 0x385   :  { %v827_v46 = vmul.f32 %v975_v38, %v826_v44 }
 0x386   :  { %v818_v47 = vmul.f32 %v973_v40, %v817_v45 }
 0x387   :  { %v828_v48 = vmul.f32 0.5, %v827_v46 }
 0x388   :  { %v819_v19 = vmul.f32 %v818_v47, %v791_v35 }
 0x389   :  { %v829_v30 = vsub.f32 1.5, %v828_v48 }
 0x38a   :  { %v821_v50 = vsel %vm820_vm7, %v791_v35, %v819_v19 }
 0x38b   :  { %v830_v49 = vmul.f32 %v975_v38, %v829_v30  ;;  %v824_v55 = vsel %vm822_vm11, %v823_v52, %v821_v50 }
 0x38d   :  { %v831_v51 = vmul.f32 %v830_v49, %v812_v41 }
 0x38f   :  { %v833_v54 = vsel %vm832_vm8, %v812_v41, %v831_v51 }
 0x390   :  { %v836_v56 = vsel %vm834_vm13, %v835_v53, %v833_v54 }
 0x391   :  { %v837_v58 = vadd.f32 %v836_v56, %v824_v55 }
 0x393   :  { %v838_v59 = vmul.f32 0.0001, %v837_v58 }
 0x395   :  { %840 = vst.msk [vmem:[#allocation4] sm:$0x1] %vm839_vm10, %v838_v59 }
 0x396   :  { %862 = dma.vmem_to_hbm [thread:$0]  %s858_s15, 16, %s860_s18, [#allocation5]  }
 0x3f4   :  { %v745_v60 = vpop.f32.mrf.mxu1 }
 0x3f5   :  { %748 = vst.msk [vmem:[#allocation2] sm:$0xff] %vm181_vm9, %v745_v60 }
 0x3f6   :  { %851 = dma.vmem_to_hbm [thread:$0]  %s847_s20, 128, %s849_s2, [#allocation3]  }
 0x3f7   :  { %1024 = dma.done.wait [#allocation3], 128  }
 0x3f8   :  { %1025 = vsyncadd [#allocation3], 4294967168 }
 0x3f9   :  { %1026 = dma.done.wait [#allocation5], 16  }
 0x3fa   :  { %1027 = vsyncadd [#allocation5], 4294967280 }
 0x3fb   :  { %871 = vsyncpa [#allocation3], 1 }
 0x3fc   :  { %872 = vsyncpa [#allocation5], 1 }

</bundles_post_ra>
